<compile_context>
chip_gen: v6e
topology: v6e:2x2x1
jax: 0.10.0
libtpu: 0.0.40
codegen_flags: <defaults>
</compile_context>

<pallas_src>
import jax
import jax.numpy as jnp
from jax import lax
from jax.experimental import pallas as pl
from jax.experimental.pallas import tpu as pltpu


# --------------------------------------------------------------------------
# Capability probe: sublane-strided + lane-offset reads of a 3-D VMEM ref.
# --------------------------------------------------------------------------
_STRIDED_OK = {}


def _sublane_strided_reads_ok(h, w):
    """One-time (per (h, w)) probe; falls back gracefully if it fails."""
    key = (h, w)
    if key not in _STRIDED_OK:
        ok = False
        if h >= 2 and w >= 2:
            try:
                with jax.ensure_compile_time_eval():
                    x = jnp.arange(2 * h * w, dtype=jnp.float32).reshape(2, h, w)
                    want = x[:, 1::2, 1:]

                    def probe(x_ref, o_ref):
                        o_ref[...] = x_ref[:, pl.ds(1, want.shape[1], stride=2),
                                           pl.ds(1, want.shape[2])]

                    got = pl.pallas_call(
                        probe,
                        out_shape=jax.ShapeDtypeStruct(want.shape, jnp.float32),
                    )(x)
                    ok = bool(jnp.allclose(got, want))
            except Exception:
                ok = False
        _STRIDED_OK[key] = ok
    return _STRIDED_OK[key]


# --------------------------------------------------------------------------
# VMEM budgeting
# --------------------------------------------------------------------------
def _vmem_limit_bytes():
    """Explicit per-kernel VMEM limit derived from the actual chip
    (v7x: 64 MiB per TensorCore, v5e/v6e: 128 MiB)."""
    try:
        phys = int(pltpu.get_tpu_info().vmem_capacity_bytes)
    except Exception:
        phys = 64 << 20                       # conservative: v7x per-TC VMEM
    return int(max(32 << 20, min(phys - (16 << 20), 96 << 20)))


def _pick_block_n(n, h, w, bytes_per_elem, scratch_bytes_per_elem, budget_bytes):
    """Images per grid step.  Counts *everything* resident per step (3 double-
    buffered inputs, f32 scratch, ~4 block-sized f32 temporaries), prefers
    >= 2 grid blocks (both v7x TensorCores), and returns a divisor of n so the
    grid tiles the image axis exactly (no padding pass, no ragged block)."""
    per_image = h * w * (2 * bytes_per_elem + scratch_bytes_per_elem + 4 * 4)
    cap = int(max(1, budget_bytes // max(per_image, 1)))
    cap = min(cap, n)
    if n > 1:
        cap = min(cap, pl.cdiv(n, 2))         # at least two grid blocks
    for cand in range(cap, 0, -1):
        if n % cand == 0:
            return cand
    return 1


# --------------------------------------------------------------------------
# Kernel
# --------------------------------------------------------------------------
def _make_grad_loss_kernel(block_n, h, w, scales, row_subsample):
    def kernel(pred_ref, targ_ref, mask_ref, out_ref, *scratch):
        # ---- one full-resolution elementwise pass over the whole block ----
        p = pred_ref[...].astype(jnp.float32)            # (bn, h, w)
        t = targ_ref[...].astype(jnp.float32)
        m = mask_ref[...].astype(jnp.float32)
        # log(x) if x > 0 else 0   (log(1) == 0 -> no NaN/Inf ever produced)
        lp = jnp.log(jnp.where(p > 0, p, 1.0))
        lt = jnp.log(jnp.where(t > 0, t, 1.0))
        diff = m * (lp - lt)

        col = lax.broadcasted_iota(jnp.int32, (1, 1, w), 2)     # lane iota
        g_sums, m_sums = [], []

        if row_subsample:
            diff_ref, m_ref = scratch
            diff_ref[...] = diff
            m_ref[...] = m
            for s in range(scales):            # static loop; shapes differ per scale
                step = 1 << s
                h_s = pl.cdiv(h, step)         # rows surviving x[:, ::step, :]
                rows = pl.ds(0, h_s, stride=step)
                csel_f = ((col & (step - 1)) == 0).astype(jnp.float32)
                m0 = m_ref[:, rows, :]                                  # (bn,h_s,w)

                g = jnp.float32(0.0)
                if w > step:
                    # x-gradient: left/right operands as static lane windows
                    wl = w - step
                    d_l = diff_ref[:, rows, pl.ds(0, wl)]
                    d_r = diff_ref[:, rows, pl.ds(step, wl)]
                    m_l = m_ref[:, rows, pl.ds(0, wl)]
                    m_r = m_ref[:, rows, pl.ds(step, wl)]
                    colx = lax.broadcasted_iota(jnp.int32, (1, 1, wl), 2)
                    cselx = ((colx & (step - 1)) == 0).astype(jnp.float32)
                    g = g + jnp.sum(jnp.abs(d_r - d_l) * (m_l * m_r) * cselx)
                if h_s > 1:
                    # y-gradient: next sampled row via a second strided load
                    d_lo = diff_ref[:, pl.ds(0, h_s - 1, stride=step), :]
                    d_hi = diff_ref[:, pl.ds(step, h_s - 1, stride=step), :]
                    m_lo = m_ref[:, pl.ds(0, h_s - 1, stride=step), :]
                    m_hi = m_ref[:, pl.ds(step, h_s - 1, stride=step), :]
                    g = g + jnp.sum(jnp.abs(d_hi - d_lo) * (m_lo * m_hi) * csel_f)

                g_sums.append(g)
                m_sums.append(jnp.sum(m0 * csel_f))    # divisor: subsampled mask count
        else:
            # Fallback (no strided sublane reads): full-resolution math with
            # sample/validity masks -- still block-vectorized, hoisted sums.
            row = lax.broadcasted_iota(jnp.int32, (1, h, 1), 1)
            m_acc = jnp.sum(m, axis=0)                             # (h, w)
            row2 = lax.broadcasted_iota(jnp.int32, (h, w), 0)
            col2 = lax.broadcasted_iota(jnp.int32, (h, w), 1)
            for s in range(scales):
                step = 1 << s
                samp = jnp.logical_and((row & (step - 1)) == 0,
                                       (col & (step - 1)) == 0)
                g = jnp.float32(0.0)
                if w > step:
                    d_r = pltpu.roll(diff, w - step, axis=2)
                    m_r = pltpu.roll(m, w - step, axis=2)
                    vx = jnp.logical_and(samp, col < w - step).astype(jnp.float32)
                    g = g + jnp.sum(jnp.abs(d_r - diff) * (m * m_r) * vx)
                if h > step:
                    d_d = pltpu.roll(diff, h - step, axis=1)
                    m_d = pltpu.roll(m, h - step, axis=1)
                    vy = jnp.logical_and(samp, row < h - step).astype(jnp.float32)
                    g = g + jnp.sum(jnp.abs(d_d - diff) * (m * m_d) * vy)
                g_sums.append(g)
                samp2 = jnp.logical_and((row2 & (step - 1)) == 0,
                                        (col2 & (step - 1)) == 0)
                m_sums.append(jnp.sum(m_acc * samp2.astype(jnp.float32)))

        # ---- pack 2*scales partial sums into one lane-aligned (8,128) tile:
        #      row 0 -> per-scale |grad| sums, row 1 -> per-scale mask counts.
        sub = lax.broadcasted_iota(jnp.int32, (8, 128), 0)
        lane = lax.broadcasted_iota(jnp.int32, (8, 128), 1)
        out = jnp.zeros((8, 128), jnp.float32)
        for s in range(scales):
            out = jnp.where(jnp.logical_and(sub == 0, lane == s), g_sums[s], out)
            out = jnp.where(jnp.logical_and(sub == 1, lane == s), m_sums[s], out)
        out_ref[0] = out

    return kernel


# --------------------------------------------------------------------------
# Wrapper
# --------------------------------------------------------------------------
def gradient_loss(prediction, target, mask, scales=4, block_n=None):
    """Pallas-TPU forward pass of GradientLoss (reduction='batch-based').

    prediction/target/mask: (b, t, c, h, w).  Inputs are streamed to the
    kernel in their native dtype (the kernel casts tiles to f32 in VMEM).
    For full lane utilization w should be >= 128 (ideally a multiple of 128).
    """
    b, t, c, h, w = target.shape
    n = b * t * c
    assert 1 <= scales <= 128, "per-scale partial sums are packed into 128 lanes"

    pred = prediction.reshape(n, h, w)
    targ = target.reshape(n, h, w)
    msk = mask.reshape(n, h, w)
    if msk.dtype == jnp.bool_:
        # TODO(synk): feed bool/int8 masks natively once that load path is validated.
        msk = msk.astype(jnp.float32)

    row_subsample = _sublane_strided_reads_ok(h, w)
    vmem_limit = _vmem_limit_bytes()
    scratch_bpe = 8 if row_subsample else 0

    if block_n is None:
        block_n = _pick_block_n(
            n, h, w,
            bytes_per_elem=(pred.dtype.itemsize + targ.dtype.itemsize
                            + msk.dtype.itemsize),
            scratch_bytes_per_elem=scratch_bpe,
            budget_bytes=min(int(vmem_limit * 0.75), 64 << 20))
    else:
        # honour the request but keep exact tiling: round down to a divisor of n
        block_n = int(max(1, min(block_n, n)))
        while n % block_n:
            block_n -= 1
    num_blocks = n // block_n

    kernel = _make_grad_loss_kernel(block_n, h, w, scales, row_subsample)
    scratch_shapes = (
        [pltpu.VMEM((block_n, h, w), jnp.float32),     # masked log-diff
         pltpu.VMEM((block_n, h, w), jnp.float32)]     # f32 mask
        if row_subsample else [])

    parts = pl.pallas_call(
        kernel,
        out_shape=jax.ShapeDtypeStruct((num_blocks, 8, 128), jnp.float32),
        grid=(num_blocks,),
        in_specs=[
            pl.BlockSpec((block_n, h, w), lambda i: (i, 0, 0)),
            pl.BlockSpec((block_n, h, w), lambda i: (i, 0, 0)),
            pl.BlockSpec((block_n, h, w), lambda i: (i, 0, 0)),
        ],
        out_specs=pl.BlockSpec((1, 8, 128), lambda i: (i, 0, 0)),
        scratch_shapes=scratch_shapes,
        compiler_params=pltpu.CompilerParams(
            dimension_semantics=("parallel",),
            vmem_limit_bytes=vmem_limit),
    )(pred, targ, msk)

    sums = parts.sum(axis=0)               # tiny (8, 128) cross-block reduction
    gsum = sums[0, :scales]                # per-scale masked |grad| sums
    msum = sums[1, :scales]                # per-scale subsampled-mask counts
    # reduction_batch_based: image_loss / sum(mask), or 0 when sum(mask) == 0
    return jnp.sum(jnp.where(msum > 0, gsum / jnp.where(msum > 0, msum, 1.0), 0.0))


# --------------------------------------------------------------------------
# Pure-JAX reference mirroring the PyTorch semantics
# --------------------------------------------------------------------------
def _reference_loss(prediction, target, mask, scales=4):
    b, t, c, h, w = target.shape
    prediction = prediction.reshape(b * t * c, h, w)
    target = target.reshape(b * t * c, h, w)
    mask = mask.reshape(b * t * c, h, w)

    total = jnp.float32(0.0)
    for scale in range(scales):
        step = 2 ** scale
        p = prediction[:, ::step, ::step]
        tg = target[:, ::step, ::step]
        m = mask[:, ::step, ::step]
        lp = jnp.where(p > 0, jnp.log(jnp.where(p > 0, p, 1.0)), 0.0)
        lt = jnp.where(tg > 0, jnp.log(jnp.where(tg > 0, tg, 1.0)), 0.0)
        diff = m * (lp - lt)
        gx = jnp.abs(diff[:, :, 1:] - diff[:, :, :-1]) * (m[:, :, 1:] * m[:, :, :-1])
        gy = jnp.abs(diff[:, 1:, :] - diff[:, :-1, :]) * (m[:, 1:, :] * m[:, :-1, :])
        grad = gx.sum() + gy.sum()
        msum = m.sum()
        total = total + jnp.where(msum > 0, grad / jnp.where(msum > 0, msum, 1.0), 0.0)
    return total


if __name__ == "__main__":
    # GradientLoss has no learnable parameters, so nothing to initialize.
    key = jax.random.PRNGKey(0)
    ks = jax.random.split(key, 6)

    def make_case(kp, kt, km, shape):
        pred = jax.random.uniform(kp, shape, jnp.float32, minval=-0.2, maxval=2.0)
        targ = jax.random.uniform(kt, shape, jnp.float32, minval=-0.2, maxval=2.0)
        msk = (jax.random.uniform(km, shape) < 0.7).astype(jnp.float32)
        return pred, targ, msk

    # Case 1: multi-image batch, small 16x16 images, explicit block_n (2 images
    # per grid step -> 3 "parallel" grid blocks).
    p1, t1, m1 = make_case(ks[0], ks[1], ks[2], (2, 3, 1, 16, 16))
    f1 = jax.jit(lambda p, tg, m: gradient_loss(p, tg, m, scales=4, block_n=2))
    out1 = jax.block_until_ready(f1(p1, t1, m1))
    ref1 = _reference_loss(p1, t1, m1, scales=4)
    assert jnp.allclose(out1, ref1, rtol=1e-4, atol=1e-4), (out1, ref1)

    # Case 2: lane-dense images (w >= 128 and not a multiple of 128, h not a
    # power of two), automatic block_n selection.
    p2, t2, m2 = make_case(ks[3], ks[4], ks[5], (1, 3, 1, 24, 136))
    f2 = jax.jit(lambda p, tg, m: gradient_loss(p, tg, m, scales=4))
    out2 = jax.block_until_ready(f2(p2, t2, m2))
    ref2 = _reference_loss(p2, t2, m2, scales=4)
    assert jnp.allclose(out2, ref2, rtol=1e-4, atol=1e-4), (out2, ref2)

    print("KERNEL_OK")
</pallas_src>

<mosaic_0001>
module attributes {stable_mosaic.version = 11 : i64} {
  func.func @kernel(%arg0: i32, %arg1: memref<2x16x16xf32, #tpu.memory_space<vmem>>, %arg2: memref<2x16x16xf32, #tpu.memory_space<vmem>>, %arg3: memref<2x16x16xf32, #tpu.memory_space<vmem>>, %arg4: memref<1x8x128xf32, #tpu.memory_space<vmem>>) attributes {dimension_semantics = [#tpu.dimension_semantics<parallel>], iteration_bounds = array<i64: 3>, scalar_prefetch = 0 : i64, scratch_operands = 0 : i64, tpu.core_type = #tpu.core_type<tc>, window_params = [{transform_indices = @transform_0, window_bounds = array<i64: 2, 16, 16>}, {transform_indices = @transform_1, window_bounds = array<i64: 2, 16, 16>}, {transform_indices = @transform_2, window_bounds = array<i64: 2, 16, 16>}, {transform_indices = @transform_3, window_bounds = array<i64: 1, 8, 128>}]} {
    %c0 = arith.constant 0 : index
    %c0_0 = arith.constant 0 : index
    %c0_1 = arith.constant 0 : index
    %0 = vector.load %arg1[%c0, %c0_0, %c0_1] : memref<2x16x16xf32, #tpu.memory_space<vmem>>, vector<2x16x16xf32>
    %c0_2 = arith.constant 0 : index
    %c0_3 = arith.constant 0 : index
    %c0_4 = arith.constant 0 : index
    %1 = vector.load %arg2[%c0_2, %c0_3, %c0_4] : memref<2x16x16xf32, #tpu.memory_space<vmem>>, vector<2x16x16xf32>
    %c0_5 = arith.constant 0 : index
    %c0_6 = arith.constant 0 : index
    %c0_7 = arith.constant 0 : index
    %2 = vector.load %arg3[%c0_5, %c0_6, %c0_7] : memref<2x16x16xf32, #tpu.memory_space<vmem>>, vector<2x16x16xf32>
    %cst = arith.constant 0.000000e+00 : f32
    %3 = vector.broadcast %cst : f32 to vector<2x16x16xf32>
    %4 = arith.cmpf ogt, %0, %3 : vector<2x16x16xf32>
    %cst_8 = arith.constant 1.000000e+00 : f32
    %5 = vector.broadcast %cst_8 : f32 to vector<2x16x16xf32>
    %6 = arith.select %4, %0, %5 : vector<2x16x16xi1>, vector<2x16x16xf32>
    %7 = math.log %6 : vector<2x16x16xf32>
    %cst_9 = arith.constant 0.000000e+00 : f32
    %8 = vector.broadcast %cst_9 : f32 to vector<2x16x16xf32>
    %9 = arith.cmpf ogt, %1, %8 : vector<2x16x16xf32>
    %cst_10 = arith.constant 1.000000e+00 : f32
    %10 = vector.broadcast %cst_10 : f32 to vector<2x16x16xf32>
    %11 = arith.select %9, %1, %10 : vector<2x16x16xi1>, vector<2x16x16xf32>
    %12 = math.log %11 : vector<2x16x16xf32>
    %13 = arith.subf %7, %12 : vector<2x16x16xf32>
    %14 = arith.mulf %2, %13 : vector<2x16x16xf32>
    %15 = tpu.iota {dimensions = array<i32: 2>} : vector<1x1x16xi32>
    %16 = tpu.iota {dimensions = array<i32: 1>} : vector<1x16x1xi32>
    %cst_11 = arith.constant dense<0.000000e+00> : vector<16x16xf32>
    %17 = vector.multi_reduction <add>, %2, %cst_11 [0] : vector<2x16x16xf32> to vector<16x16xf32>
    %18 = tpu.iota {dimensions = array<i32: 0>} : vector<16x16xi32>
    %19 = tpu.iota {dimensions = array<i32: 1>} : vector<16x16xi32>
    %c0_i32 = arith.constant 0 : i32
    %20 = vector.broadcast %c0_i32 : i32 to vector<1x16x1xi32>
    %21 = arith.andi %16, %20 : vector<1x16x1xi32>
    %c0_i32_12 = arith.constant 0 : i32
    %22 = vector.broadcast %c0_i32_12 : i32 to vector<1x16x1xi32>
    %23 = arith.cmpi eq, %21, %22 : vector<1x16x1xi32>
    %c0_i32_13 = arith.constant 0 : i32
    %24 = vector.broadcast %c0_i32_13 : i32 to vector<1x1x16xi32>
    %25 = arith.andi %15, %24 : vector<1x1x16xi32>
    %c0_i32_14 = arith.constant 0 : i32
    %26 = vector.broadcast %c0_i32_14 : i32 to vector<1x1x16xi32>
    %27 = arith.cmpi eq, %25, %26 : vector<1x1x16xi32>
    %28 = vector.broadcast %23 : vector<1x16x1xi1> to vector<1x16x16xi1>
    %29 = vector.broadcast %27 : vector<1x1x16xi1> to vector<1x16x16xi1>
    %30 = arith.andi %28, %29 : vector<1x16x16xi1>
    %c15_i32 = arith.constant 15 : i32
    %31 = tpu.dynamic_rotate %14 by %c15_i32 dim 2 : vector<2x16x16xf32>, i32 -> vector<2x16x16xf32>
    %c15_i32_15 = arith.constant 15 : i32
    %32 = tpu.dynamic_rotate %2 by %c15_i32_15 dim 2 : vector<2x16x16xf32>, i32 -> vector<2x16x16xf32>
    %c15_i32_16 = arith.constant 15 : i32
    %33 = vector.broadcast %c15_i32_16 : i32 to vector<1x1x16xi32>
    %34 = arith.cmpi slt, %15, %33 : vector<1x1x16xi32>
    %35 = vector.broadcast %34 : vector<1x1x16xi1> to vector<1x16x16xi1>
    %36 = arith.andi %30, %35 : vector<1x16x16xi1>
    %37 = arith.extui %36 : vector<1x16x16xi1> to vector<1x16x16xi32>
    %38 = arith.sitofp %37 : vector<1x16x16xi32> to vector<1x16x16xf32>
    %39 = arith.subf %31, %14 : vector<2x16x16xf32>
    %40 = math.absf %39 : vector<2x16x16xf32>
    %41 = arith.mulf %2, %32 : vector<2x16x16xf32>
    %42 = arith.mulf %40, %41 : vector<2x16x16xf32>
    %43 = vector.broadcast %38 : vector<1x16x16xf32> to vector<2x16x16xf32>
    %44 = arith.mulf %42, %43 : vector<2x16x16xf32>
    %45 = vector.shape_cast %44 : vector<2x16x16xf32> to vector<1x2x16x16xf32>
    %cst_17 = arith.constant dense<0.000000e+00> : vector<1xf32>
    %46 = vector.multi_reduction <add>, %45, %cst_17 [1, 2, 3] : vector<1x2x16x16xf32> to vector<1xf32>
    %47 = vector.shape_cast %46 : vector<1xf32> to vector<1x1x1x1xf32>
    %48 = vector.extract %47[0, 0, 0, 0] : f32 from vector<1x1x1x1xf32>
    %cst_18 = arith.constant 0.000000e+00 : f32
    %49 = arith.addf %cst_18, %48 : f32
    %c15_i32_19 = arith.constant 15 : i32
    %50 = tpu.dynamic_rotate %14 by %c15_i32_19 dim 1 : vector<2x16x16xf32>, i32 -> vector<2x16x16xf32>
    %c15_i32_20 = arith.constant 15 : i32
    %51 = tpu.dynamic_rotate %2 by %c15_i32_20 dim 1 : vector<2x16x16xf32>, i32 -> vector<2x16x16xf32>
    %c15_i32_21 = arith.constant 15 : i32
    %52 = vector.broadcast %c15_i32_21 : i32 to vector<1x16x1xi32>
    %53 = arith.cmpi slt, %16, %52 : vector<1x16x1xi32>
    %54 = vector.broadcast %53 : vector<1x16x1xi1> to vector<1x16x16xi1>
    %55 = arith.andi %30, %54 : vector<1x16x16xi1>
    %56 = arith.extui %55 : vector<1x16x16xi1> to vector<1x16x16xi32>
    %57 = arith.sitofp %56 : vector<1x16x16xi32> to vector<1x16x16xf32>
    %58 = arith.subf %50, %14 : vector<2x16x16xf32>
    %59 = math.absf %58 : vector<2x16x16xf32>
    %60 = arith.mulf %2, %51 : vector<2x16x16xf32>
    %61 = arith.mulf %59, %60 : vector<2x16x16xf32>
    %62 = vector.broadcast %57 : vector<1x16x16xf32> to vector<2x16x16xf32>
    %63 = arith.mulf %61, %62 : vector<2x16x16xf32>
    %64 = vector.shape_cast %63 : vector<2x16x16xf32> to vector<1x2x16x16xf32>
    %cst_22 = arith.constant dense<0.000000e+00> : vector<1xf32>
    %65 = vector.multi_reduction <add>, %64, %cst_22 [1, 2, 3] : vector<1x2x16x16xf32> to vector<1xf32>
    %66 = vector.shape_cast %65 : vector<1xf32> to vector<1x1x1x1xf32>
    %67 = vector.extract %66[0, 0, 0, 0] : f32 from vector<1x1x1x1xf32>
    %68 = arith.addf %49, %67 : f32
    %c0_i32_23 = arith.constant 0 : i32
    %69 = vector.broadcast %c0_i32_23 : i32 to vector<16x16xi32>
    %70 = arith.andi %18, %69 : vector<16x16xi32>
    %c0_i32_24 = arith.constant 0 : i32
    %71 = vector.broadcast %c0_i32_24 : i32 to vector<16x16xi32>
    %72 = arith.cmpi eq, %70, %71 : vector<16x16xi32>
    %c0_i32_25 = arith.constant 0 : i32
    %73 = vector.broadcast %c0_i32_25 : i32 to vector<16x16xi32>
    %74 = arith.andi %19, %73 : vector<16x16xi32>
    %c0_i32_26 = arith.constant 0 : i32
    %75 = vector.broadcast %c0_i32_26 : i32 to vector<16x16xi32>
    %76 = arith.cmpi eq, %74, %75 : vector<16x16xi32>
    %77 = arith.andi %72, %76 : vector<16x16xi1>
    %78 = arith.extui %77 : vector<16x16xi1> to vector<16x16xi32>
    %79 = arith.sitofp %78 : vector<16x16xi32> to vector<16x16xf32>
    %80 = arith.mulf %17, %79 : vector<16x16xf32>
    %81 = vector.shape_cast %80 : vector<16x16xf32> to vector<1x16x16xf32>
    %cst_27 = arith.constant dense<0.000000e+00> : vector<1xf32>
    %82 = vector.multi_reduction <add>, %81, %cst_27 [1, 2] : vector<1x16x16xf32> to vector<1xf32>
    %83 = vector.shape_cast %82 : vector<1xf32> to vector<1x1x1xf32>
    %84 = vector.extract %83[0, 0, 0] : f32 from vector<1x1x1xf32>
    %c1_i32 = arith.constant 1 : i32
    %85 = vector.broadcast %c1_i32 : i32 to vector<1x16x1xi32>
    %86 = arith.andi %16, %85 : vector<1x16x1xi32>
    %c0_i32_28 = arith.constant 0 : i32
    %87 = vector.broadcast %c0_i32_28 : i32 to vector<1x16x1xi32>
    %88 = arith.cmpi eq, %86, %87 : vector<1x16x1xi32>
    %c1_i32_29 = arith.constant 1 : i32
    %89 = vector.broadcast %c1_i32_29 : i32 to vector<1x1x16xi32>
    %90 = arith.andi %15, %89 : vector<1x1x16xi32>
    %c0_i32_30 = arith.constant 0 : i32
    %91 = vector.broadcast %c0_i32_30 : i32 to vector<1x1x16xi32>
    %92 = arith.cmpi eq, %90, %91 : vector<1x1x16xi32>
    %93 = vector.broadcast %88 : vector<1x16x1xi1> to vector<1x16x16xi1>
    %94 = vector.broadcast %92 : vector<1x1x16xi1> to vector<1x16x16xi1>
    %95 = arith.andi %93, %94 : vector<1x16x16xi1>
    %c14_i32 = arith.constant 14 : i32
    %96 = tpu.dynamic_rotate %14 by %c14_i32 dim 2 : vector<2x16x16xf32>, i32 -> vector<2x16x16xf32>
    %c14_i32_31 = arith.constant 14 : i32
    %97 = tpu.dynamic_rotate %2 by %c14_i32_31 dim 2 : vector<2x16x16xf32>, i32 -> vector<2x16x16xf32>
    %c14_i32_32 = arith.constant 14 : i32
    %98 = vector.broadcast %c14_i32_32 : i32 to vector<1x1x16xi32>
    %99 = arith.cmpi slt, %15, %98 : vector<1x1x16xi32>
    %100 = vector.broadcast %99 : vector<1x1x16xi1> to vector<1x16x16xi1>
    %101 = arith.andi %95, %100 : vector<1x16x16xi1>
    %102 = arith.extui %101 : vector<1x16x16xi1> to vector<1x16x16xi32>
    %103 = arith.sitofp %102 : vector<1x16x16xi32> to vector<1x16x16xf32>
    %104 = arith.subf %96, %14 : vector<2x16x16xf32>
    %105 = math.absf %104 : vector<2x16x16xf32>
    %106 = arith.mulf %2, %97 : vector<2x16x16xf32>
    %107 = arith.mulf %105, %106 : vector<2x16x16xf32>
    %108 = vector.broadcast %103 : vector<1x16x16xf32> to vector<2x16x16xf32>
    %109 = arith.mulf %107, %108 : vector<2x16x16xf32>
    %110 = vector.shape_cast %109 : vector<2x16x16xf32> to vector<1x2x16x16xf32>
    %cst_33 = arith.constant dense<0.000000e+00> : vector<1xf32>
    %111 = vector.multi_reduction <add>, %110, %cst_33 [1, 2, 3] : vector<1x2x16x16xf32> to vector<1xf32>
    %112 = vector.shape_cast %111 : vector<1xf32> to vector<1x1x1x1xf32>
    %113 = vector.extract %112[0, 0, 0, 0] : f32 from vector<1x1x1x1xf32>
    %cst_34 = arith.constant 0.000000e+00 : f32
    %114 = arith.addf %cst_34, %113 : f32
    %c14_i32_35 = arith.constant 14 : i32
    %115 = tpu.dynamic_rotate %14 by %c14_i32_35 dim 1 : vector<2x16x16xf32>, i32 -> vector<2x16x16xf32>
    %c14_i32_36 = arith.constant 14 : i32
    %116 = tpu.dynamic_rotate %2 by %c14_i32_36 dim 1 : vector<2x16x16xf32>, i32 -> vector<2x16x16xf32>
    %c14_i32_37 = arith.constant 14 : i32
    %117 = vector.broadcast %c14_i32_37 : i32 to vector<1x16x1xi32>
    %118 = arith.cmpi slt, %16, %117 : vector<1x16x1xi32>
    %119 = vector.broadcast %118 : vector<1x16x1xi1> to vector<1x16x16xi1>
    %120 = arith.andi %95, %119 : vector<1x16x16xi1>
    %121 = arith.extui %120 : vector<1x16x16xi1> to vector<1x16x16xi32>
    %122 = arith.sitofp %121 : vector<1x16x16xi32> to vector<1x16x16xf32>
    %123 = arith.subf %115, %14 : vector<2x16x16xf32>
    %124 = math.absf %123 : vector<2x16x16xf32>
    %125 = arith.mulf %2, %116 : vector<2x16x16xf32>
    %126 = arith.mulf %124, %125 : vector<2x16x16xf32>
    %127 = vector.broadcast %122 : vector<1x16x16xf32> to vector<2x16x16xf32>
    %128 = arith.mulf %126, %127 : vector<2x16x16xf32>
    %129 = vector.shape_cast %128 : vector<2x16x16xf32> to vector<1x2x16x16xf32>
    %cst_38 = arith.constant dense<0.000000e+00> : vector<1xf32>
    %130 = vector.multi_reduction <add>, %129, %cst_38 [1, 2, 3] : vector<1x2x16x16xf32> to vector<1xf32>
    %131 = vector.shape_cast %130 : vector<1xf32> to vector<1x1x1x1xf32>
    %132 = vector.extract %131[0, 0, 0, 0] : f32 from vector<1x1x1x1xf32>
    %133 = arith.addf %114, %132 : f32
    %c1_i32_39 = arith.constant 1 : i32
    %134 = vector.broadcast %c1_i32_39 : i32 to vector<16x16xi32>
    %135 = arith.andi %18, %134 : vector<16x16xi32>
    %c0_i32_40 = arith.constant 0 : i32
    %136 = vector.broadcast %c0_i32_40 : i32 to vector<16x16xi32>
    %137 = arith.cmpi eq, %135, %136 : vector<16x16xi32>
    %c1_i32_41 = arith.constant 1 : i32
    %138 = vector.broadcast %c1_i32_41 : i32 to vector<16x16xi32>
    %139 = arith.andi %19, %138 : vector<16x16xi32>
    %c0_i32_42 = arith.constant 0 : i32
    %140 = vector.broadcast %c0_i32_42 : i32 to vector<16x16xi32>
    %141 = arith.cmpi eq, %139, %140 : vector<16x16xi32>
    %142 = arith.andi %137, %141 : vector<16x16xi1>
    %143 = arith.extui %142 : vector<16x16xi1> to vector<16x16xi32>
    %144 = arith.sitofp %143 : vector<16x16xi32> to vector<16x16xf32>
    %145 = arith.mulf %17, %144 : vector<16x16xf32>
    %146 = vector.shape_cast %145 : vector<16x16xf32> to vector<1x16x16xf32>
    %cst_43 = arith.constant dense<0.000000e+00> : vector<1xf32>
    %147 = vector.multi_reduction <add>, %146, %cst_43 [1, 2] : vector<1x16x16xf32> to vector<1xf32>
    %148 = vector.shape_cast %147 : vector<1xf32> to vector<1x1x1xf32>
    %149 = vector.extract %148[0, 0, 0] : f32 from vector<1x1x1xf32>
    %c3_i32 = arith.constant 3 : i32
    %150 = vector.broadcast %c3_i32 : i32 to vector<1x16x1xi32>
    %151 = arith.andi %16, %150 : vector<1x16x1xi32>
    %c0_i32_44 = arith.constant 0 : i32
    %152 = vector.broadcast %c0_i32_44 : i32 to vector<1x16x1xi32>
    %153 = arith.cmpi eq, %151, %152 : vector<1x16x1xi32>
    %c3_i32_45 = arith.constant 3 : i32
    %154 = vector.broadcast %c3_i32_45 : i32 to vector<1x1x16xi32>
    %155 = arith.andi %15, %154 : vector<1x1x16xi32>
    %c0_i32_46 = arith.constant 0 : i32
    %156 = vector.broadcast %c0_i32_46 : i32 to vector<1x1x16xi32>
    %157 = arith.cmpi eq, %155, %156 : vector<1x1x16xi32>
    %158 = vector.broadcast %153 : vector<1x16x1xi1> to vector<1x16x16xi1>
    %159 = vector.broadcast %157 : vector<1x1x16xi1> to vector<1x16x16xi1>
    %160 = arith.andi %158, %159 : vector<1x16x16xi1>
    %c12_i32 = arith.constant 12 : i32
    %161 = tpu.dynamic_rotate %14 by %c12_i32 dim 2 : vector<2x16x16xf32>, i32 -> vector<2x16x16xf32>
    %c12_i32_47 = arith.constant 12 : i32
    %162 = tpu.dynamic_rotate %2 by %c12_i32_47 dim 2 : vector<2x16x16xf32>, i32 -> vector<2x16x16xf32>
    %c12_i32_48 = arith.constant 12 : i32
    %163 = vector.broadcast %c12_i32_48 : i32 to vector<1x1x16xi32>
    %164 = arith.cmpi slt, %15, %163 : vector<1x1x16xi32>
    %165 = vector.broadcast %164 : vector<1x1x16xi1> to vector<1x16x16xi1>
    %166 = arith.andi %160, %165 : vector<1x16x16xi1>
    %167 = arith.extui %166 : vector<1x16x16xi1> to vector<1x16x16xi32>
    %168 = arith.sitofp %167 : vector<1x16x16xi32> to vector<1x16x16xf32>
    %169 = arith.subf %161, %14 : vector<2x16x16xf32>
    %170 = math.absf %169 : vector<2x16x16xf32>
    %171 = arith.mulf %2, %162 : vector<2x16x16xf32>
    %172 = arith.mulf %170, %171 : vector<2x16x16xf32>
    %173 = vector.broadcast %168 : vector<1x16x16xf32> to vector<2x16x16xf32>
    %174 = arith.mulf %172, %173 : vector<2x16x16xf32>
    %175 = vector.shape_cast %174 : vector<2x16x16xf32> to vector<1x2x16x16xf32>
    %cst_49 = arith.constant dense<0.000000e+00> : vector<1xf32>
    %176 = vector.multi_reduction <add>, %175, %cst_49 [1, 2, 3] : vector<1x2x16x16xf32> to vector<1xf32>
    %177 = vector.shape_cast %176 : vector<1xf32> to vector<1x1x1x1xf32>
    %178 = vector.extract %177[0, 0, 0, 0] : f32 from vector<1x1x1x1xf32>
    %cst_50 = arith.constant 0.000000e+00 : f32
    %179 = arith.addf %cst_50, %178 : f32
    %c12_i32_51 = arith.constant 12 : i32
    %180 = tpu.dynamic_rotate %14 by %c12_i32_51 dim 1 : vector<2x16x16xf32>, i32 -> vector<2x16x16xf32>
    %c12_i32_52 = arith.constant 12 : i32
    %181 = tpu.dynamic_rotate %2 by %c12_i32_52 dim 1 : vector<2x16x16xf32>, i32 -> vector<2x16x16xf32>
    %c12_i32_53 = arith.constant 12 : i32
    %182 = vector.broadcast %c12_i32_53 : i32 to vector<1x16x1xi32>
    %183 = arith.cmpi slt, %16, %182 : vector<1x16x1xi32>
    %184 = vector.broadcast %183 : vector<1x16x1xi1> to vector<1x16x16xi1>
    %185 = arith.andi %160, %184 : vector<1x16x16xi1>
    %186 = arith.extui %185 : vector<1x16x16xi1> to vector<1x16x16xi32>
    %187 = arith.sitofp %186 : vector<1x16x16xi32> to vector<1x16x16xf32>
    %188 = arith.subf %180, %14 : vector<2x16x16xf32>
    %189 = math.absf %188 : vector<2x16x16xf32>
    %190 = arith.mulf %2, %181 : vector<2x16x16xf32>
    %191 = arith.mulf %189, %190 : vector<2x16x16xf32>
    %192 = vector.broadcast %187 : vector<1x16x16xf32> to vector<2x16x16xf32>
    %193 = arith.mulf %191, %192 : vector<2x16x16xf32>
    %194 = vector.shape_cast %193 : vector<2x16x16xf32> to vector<1x2x16x16xf32>
    %cst_54 = arith.constant dense<0.000000e+00> : vector<1xf32>
    %195 = vector.multi_reduction <add>, %194, %cst_54 [1, 2, 3] : vector<1x2x16x16xf32> to vector<1xf32>
    %196 = vector.shape_cast %195 : vector<1xf32> to vector<1x1x1x1xf32>
    %197 = vector.extract %196[0, 0, 0, 0] : f32 from vector<1x1x1x1xf32>
    %198 = arith.addf %179, %197 : f32
    %c3_i32_55 = arith.constant 3 : i32
    %199 = vector.broadcast %c3_i32_55 : i32 to vector<16x16xi32>
    %200 = arith.andi %18, %199 : vector<16x16xi32>
    %c0_i32_56 = arith.constant 0 : i32
    %201 = vector.broadcast %c0_i32_56 : i32 to vector<16x16xi32>
    %202 = arith.cmpi eq, %200, %201 : vector<16x16xi32>
    %c3_i32_57 = arith.constant 3 : i32
    %203 = vector.broadcast %c3_i32_57 : i32 to vector<16x16xi32>
    %204 = arith.andi %19, %203 : vector<16x16xi32>
    %c0_i32_58 = arith.constant 0 : i32
    %205 = vector.broadcast %c0_i32_58 : i32 to vector<16x16xi32>
    %206 = arith.cmpi eq, %204, %205 : vector<16x16xi32>
    %207 = arith.andi %202, %206 : vector<16x16xi1>
    %208 = arith.extui %207 : vector<16x16xi1> to vector<16x16xi32>
    %209 = arith.sitofp %208 : vector<16x16xi32> to vector<16x16xf32>
    %210 = arith.mulf %17, %209 : vector<16x16xf32>
    %211 = vector.shape_cast %210 : vector<16x16xf32> to vector<1x16x16xf32>
    %cst_59 = arith.constant dense<0.000000e+00> : vector<1xf32>
    %212 = vector.multi_reduction <add>, %211, %cst_59 [1, 2] : vector<1x16x16xf32> to vector<1xf32>
    %213 = vector.shape_cast %212 : vector<1xf32> to vector<1x1x1xf32>
    %214 = vector.extract %213[0, 0, 0] : f32 from vector<1x1x1xf32>
    %c7_i32 = arith.constant 7 : i32
    %215 = vector.broadcast %c7_i32 : i32 to vector<1x16x1xi32>
    %216 = arith.andi %16, %215 : vector<1x16x1xi32>
    %c0_i32_60 = arith.constant 0 : i32
    %217 = vector.broadcast %c0_i32_60 : i32 to vector<1x16x1xi32>
    %218 = arith.cmpi eq, %216, %217 : vector<1x16x1xi32>
    %c7_i32_61 = arith.constant 7 : i32
    %219 = vector.broadcast %c7_i32_61 : i32 to vector<1x1x16xi32>
    %220 = arith.andi %15, %219 : vector<1x1x16xi32>
    %c0_i32_62 = arith.constant 0 : i32
    %221 = vector.broadcast %c0_i32_62 : i32 to vector<1x1x16xi32>
    %222 = arith.cmpi eq, %220, %221 : vector<1x1x16xi32>
    %223 = vector.broadcast %218 : vector<1x16x1xi1> to vector<1x16x16xi1>
    %224 = vector.broadcast %222 : vector<1x1x16xi1> to vector<1x16x16xi1>
    %225 = arith.andi %223, %224 : vector<1x16x16xi1>
    %c8_i32 = arith.constant 8 : i32
    %226 = tpu.dynamic_rotate %14 by %c8_i32 dim 2 : vector<2x16x16xf32>, i32 -> vector<2x16x16xf32>
    %c8_i32_63 = arith.constant 8 : i32
    %227 = tpu.dynamic_rotate %2 by %c8_i32_63 dim 2 : vector<2x16x16xf32>, i32 -> vector<2x16x16xf32>
    %c8_i32_64 = arith.constant 8 : i32
    %228 = vector.broadcast %c8_i32_64 : i32 to vector<1x1x16xi32>
    %229 = arith.cmpi slt, %15, %228 : vector<1x1x16xi32>
    %230 = vector.broadcast %229 : vector<1x1x16xi1> to vector<1x16x16xi1>
    %231 = arith.andi %225, %230 : vector<1x16x16xi1>
    %232 = arith.extui %231 : vector<1x16x16xi1> to vector<1x16x16xi32>
    %233 = arith.sitofp %232 : vector<1x16x16xi32> to vector<1x16x16xf32>
    %234 = arith.subf %226, %14 : vector<2x16x16xf32>
    %235 = math.absf %234 : vector<2x16x16xf32>
    %236 = arith.mulf %2, %227 : vector<2x16x16xf32>
    %237 = arith.mulf %235, %236 : vector<2x16x16xf32>
    %238 = vector.broadcast %233 : vector<1x16x16xf32> to vector<2x16x16xf32>
    %239 = arith.mulf %237, %238 : vector<2x16x16xf32>
    %240 = vector.shape_cast %239 : vector<2x16x16xf32> to vector<1x2x16x16xf32>
    %cst_65 = arith.constant dense<0.000000e+00> : vector<1xf32>
    %241 = vector.multi_reduction <add>, %240, %cst_65 [1, 2, 3] : vector<1x2x16x16xf32> to vector<1xf32>
    %242 = vector.shape_cast %241 : vector<1xf32> to vector<1x1x1x1xf32>
    %243 = vector.extract %242[0, 0, 0, 0] : f32 from vector<1x1x1x1xf32>
    %cst_66 = arith.constant 0.000000e+00 : f32
    %244 = arith.addf %cst_66, %243 : f32
    %c8_i32_67 = arith.constant 8 : i32
    %245 = tpu.dynamic_rotate %14 by %c8_i32_67 dim 1 : vector<2x16x16xf32>, i32 -> vector<2x16x16xf32>
    %c8_i32_68 = arith.constant 8 : i32
    %246 = tpu.dynamic_rotate %2 by %c8_i32_68 dim 1 : vector<2x16x16xf32>, i32 -> vector<2x16x16xf32>
    %c8_i32_69 = arith.constant 8 : i32
    %247 = vector.broadcast %c8_i32_69 : i32 to vector<1x16x1xi32>
    %248 = arith.cmpi slt, %16, %247 : vector<1x16x1xi32>
    %249 = vector.broadcast %248 : vector<1x16x1xi1> to vector<1x16x16xi1>
    %250 = arith.andi %225, %249 : vector<1x16x16xi1>
    %251 = arith.extui %250 : vector<1x16x16xi1> to vector<1x16x16xi32>
    %252 = arith.sitofp %251 : vector<1x16x16xi32> to vector<1x16x16xf32>
    %253 = arith.subf %245, %14 : vector<2x16x16xf32>
    %254 = math.absf %253 : vector<2x16x16xf32>
    %255 = arith.mulf %2, %246 : vector<2x16x16xf32>
    %256 = arith.mulf %254, %255 : vector<2x16x16xf32>
    %257 = vector.broadcast %252 : vector<1x16x16xf32> to vector<2x16x16xf32>
    %258 = arith.mulf %256, %257 : vector<2x16x16xf32>
    %259 = vector.shape_cast %258 : vector<2x16x16xf32> to vector<1x2x16x16xf32>
    %cst_70 = arith.constant dense<0.000000e+00> : vector<1xf32>
    %260 = vector.multi_reduction <add>, %259, %cst_70 [1, 2, 3] : vector<1x2x16x16xf32> to vector<1xf32>
    %261 = vector.shape_cast %260 : vector<1xf32> to vector<1x1x1x1xf32>
    %262 = vector.extract %261[0, 0, 0, 0] : f32 from vector<1x1x1x1xf32>
    %263 = arith.addf %244, %262 : f32
    %c7_i32_71 = arith.constant 7 : i32
    %264 = vector.broadcast %c7_i32_71 : i32 to vector<16x16xi32>
    %265 = arith.andi %18, %264 : vector<16x16xi32>
    %c0_i32_72 = arith.constant 0 : i32
    %266 = vector.broadcast %c0_i32_72 : i32 to vector<16x16xi32>
    %267 = arith.cmpi eq, %265, %266 : vector<16x16xi32>
    %c7_i32_73 = arith.constant 7 : i32
    %268 = vector.broadcast %c7_i32_73 : i32 to vector<16x16xi32>
    %269 = arith.andi %19, %268 : vector<16x16xi32>
    %c0_i32_74 = arith.constant 0 : i32
    %270 = vector.broadcast %c0_i32_74 : i32 to vector<16x16xi32>
    %271 = arith.cmpi eq, %269, %270 : vector<16x16xi32>
    %272 = arith.andi %267, %271 : vector<16x16xi1>
    %273 = arith.extui %272 : vector<16x16xi1> to vector<16x16xi32>
    %274 = arith.sitofp %273 : vector<16x16xi32> to vector<16x16xf32>
    %275 = arith.mulf %17, %274 : vector<16x16xf32>
    %276 = vector.shape_cast %275 : vector<16x16xf32> to vector<1x16x16xf32>
    %cst_75 = arith.constant dense<0.000000e+00> : vector<1xf32>
    %277 = vector.multi_reduction <add>, %276, %cst_75 [1, 2] : vector<1x16x16xf32> to vector<1xf32>
    %278 = vector.shape_cast %277 : vector<1xf32> to vector<1x1x1xf32>
    %279 = vector.extract %278[0, 0, 0] : f32 from vector<1x1x1xf32>
    %280 = tpu.iota {dimensions = array<i32: 0>} : vector<8x128xi32>
    %281 = tpu.iota {dimensions = array<i32: 1>} : vector<8x128xi32>
    %cst_76 = arith.constant 0.000000e+00 : f32
    %282 = vector.broadcast %cst_76 : f32 to vector<8x128xf32>
    %c0_i32_77 = arith.constant 0 : i32
    %283 = vector.broadcast %c0_i32_77 : i32 to vector<8x128xi32>
    %284 = arith.cmpi eq, %280, %283 : vector<8x128xi32>
    %c0_i32_78 = arith.constant 0 : i32
    %285 = vector.broadcast %c0_i32_78 : i32 to vector<8x128xi32>
    %286 = arith.cmpi eq, %281, %285 : vector<8x128xi32>
    %287 = arith.andi %284, %286 : vector<8x128xi1>
    %288 = vector.broadcast %68 : f32 to vector<8x128xf32>
    %289 = arith.select %287, %288, %282 : vector<8x128xi1>, vector<8x128xf32>
    %c1_i32_79 = arith.constant 1 : i32
    %290 = vector.broadcast %c1_i32_79 : i32 to vector<8x128xi32>
    %291 = arith.cmpi eq, %280, %290 : vector<8x128xi32>
    %c0_i32_80 = arith.constant 0 : i32
    %292 = vector.broadcast %c0_i32_80 : i32 to vector<8x128xi32>
    %293 = arith.cmpi eq, %281, %292 : vector<8x128xi32>
    %294 = arith.andi %291, %293 : vector<8x128xi1>
    %295 = vector.broadcast %84 : f32 to vector<8x128xf32>
    %296 = arith.select %294, %295, %289 : vector<8x128xi1>, vector<8x128xf32>
    %c0_i32_81 = arith.constant 0 : i32
    %297 = vector.broadcast %c0_i32_81 : i32 to vector<8x128xi32>
    %298 = arith.cmpi eq, %280, %297 : vector<8x128xi32>
    %c1_i32_82 = arith.constant 1 : i32
    %299 = vector.broadcast %c1_i32_82 : i32 to vector<8x128xi32>
    %300 = arith.cmpi eq, %281, %299 : vector<8x128xi32>
    %301 = arith.andi %298, %300 : vector<8x128xi1>
    %302 = vector.broadcast %133 : f32 to vector<8x128xf32>
    %303 = arith.select %301, %302, %296 : vector<8x128xi1>, vector<8x128xf32>
    %c1_i32_83 = arith.constant 1 : i32
    %304 = vector.broadcast %c1_i32_83 : i32 to vector<8x128xi32>
    %305 = arith.cmpi eq, %280, %304 : vector<8x128xi32>
    %c1_i32_84 = arith.constant 1 : i32
    %306 = vector.broadcast %c1_i32_84 : i32 to vector<8x128xi32>
    %307 = arith.cmpi eq, %281, %306 : vector<8x128xi32>
    %308 = arith.andi %305, %307 : vector<8x128xi1>
    %309 = vector.broadcast %149 : f32 to vector<8x128xf32>
    %310 = arith.select %308, %309, %303 : vector<8x128xi1>, vector<8x128xf32>
    %c0_i32_85 = arith.constant 0 : i32
    %311 = vector.broadcast %c0_i32_85 : i32 to vector<8x128xi32>
    %312 = arith.cmpi eq, %280, %311 : vector<8x128xi32>
    %c2_i32 = arith.constant 2 : i32
    %313 = vector.broadcast %c2_i32 : i32 to vector<8x128xi32>
    %314 = arith.cmpi eq, %281, %313 : vector<8x128xi32>
    %315 = arith.andi %312, %314 : vector<8x128xi1>
    %316 = vector.broadcast %198 : f32 to vector<8x128xf32>
    %317 = arith.select %315, %316, %310 : vector<8x128xi1>, vector<8x128xf32>
    %c1_i32_86 = arith.constant 1 : i32
    %318 = vector.broadcast %c1_i32_86 : i32 to vector<8x128xi32>
    %319 = arith.cmpi eq, %280, %318 : vector<8x128xi32>
    %c2_i32_87 = arith.constant 2 : i32
    %320 = vector.broadcast %c2_i32_87 : i32 to vector<8x128xi32>
    %321 = arith.cmpi eq, %281, %320 : vector<8x128xi32>
    %322 = arith.andi %319, %321 : vector<8x128xi1>
    %323 = vector.broadcast %214 : f32 to vector<8x128xf32>
    %324 = arith.select %322, %323, %317 : vector<8x128xi1>, vector<8x128xf32>
    %c0_i32_88 = arith.constant 0 : i32
    %325 = vector.broadcast %c0_i32_88 : i32 to vector<8x128xi32>
    %326 = arith.cmpi eq, %280, %325 : vector<8x128xi32>
    %c3_i32_89 = arith.constant 3 : i32
    %327 = vector.broadcast %c3_i32_89 : i32 to vector<8x128xi32>
    %328 = arith.cmpi eq, %281, %327 : vector<8x128xi32>
    %329 = arith.andi %326, %328 : vector<8x128xi1>
    %330 = vector.broadcast %263 : f32 to vector<8x128xf32>
    %331 = arith.select %329, %330, %324 : vector<8x128xi1>, vector<8x128xf32>
    %c1_i32_90 = arith.constant 1 : i32
    %332 = vector.broadcast %c1_i32_90 : i32 to vector<8x128xi32>
    %333 = arith.cmpi eq, %280, %332 : vector<8x128xi32>
    %c3_i32_91 = arith.constant 3 : i32
    %334 = vector.broadcast %c3_i32_91 : i32 to vector<8x128xi32>
    %335 = arith.cmpi eq, %281, %334 : vector<8x128xi32>
    %336 = arith.andi %333, %335 : vector<8x128xi1>
    %337 = vector.broadcast %279 : f32 to vector<8x128xf32>
    %338 = arith.select %336, %337, %331 : vector<8x128xi1>, vector<8x128xf32>
    %c0_92 = arith.constant 0 : index
    %c0_93 = arith.constant 0 : index
    %c0_94 = arith.constant 0 : index
    %339 = vector.load %arg4[%c0_92, %c0_93, %c0_94] : memref<1x8x128xf32, #tpu.memory_space<vmem>>, vector<1x8x128xf32>
    %340 = vector.shape_cast %339 : vector<1x8x128xf32> to vector<8x128xf32>
    %341 = vector.shape_cast %338 : vector<8x128xf32> to vector<1x8x128xf32>
    tpu.vector_store %arg4[%c0_92, %c0_93, %c0_94], %341 {strides = array<i32>} : memref<1x8x128xf32, #tpu.memory_space<vmem>>, vector<1x8x128xf32>,
    return
  }
  func.func @transform_0(%arg0: i32) -> (i32, i32, i32) {
    %c0_i32 = arith.constant 0 : i32
    %c0_i32_0 = arith.constant 0 : i32
    %c0_i32_1 = arith.constant 0 : i32
    return %arg0, %c0_i32, %c0_i32_0 : i32, i32, i32
  }
  func.func @transform_1(%arg0: i32) -> (i32, i32, i32) {
    %c0_i32 = arith.constant 0 : i32
    %c0_i32_0 = arith.constant 0 : i32
    %c0_i32_1 = arith.constant 0 : i32
    return %arg0, %c0_i32, %c0_i32_0 : i32, i32, i32
  }
  func.func @transform_2(%arg0: i32) -> (i32, i32, i32) {
    %c0_i32 = arith.constant 0 : i32
    %c0_i32_0 = arith.constant 0 : i32
    %c0_i32_1 = arith.constant 0 : i32
    return %arg0, %c0_i32, %c0_i32_0 : i32, i32, i32
  }
  func.func @transform_3(%arg0: i32) -> (i32, i32, i32) {
    %c0_i32 = arith.constant 0 : i32
    %c0_i32_0 = arith.constant 0 : i32
    %c0_i32_1 = arith.constant 0 : i32
    return %arg0, %c0_i32, %c0_i32_0 : i32, i32, i32
  }
}

</mosaic_0001>

<bundles_post_ra>
// kernel: _lambda_.1
= control target key start
LH: loop header
LB: loop body
LE: loop exit
PB: predicated region body
PF: predicated region fallthrough
CT: control target
= control target key end

     0   :  { %8 = vsyncpa [#allocation3], 0  ;;  %s2518_s0 = inlined_call_operand.hbm [shape: f32[6,16,16], index: 0, kind: input, shape index: {}]   ;;  %s2519_s1 = inlined_call_operand.hbm [shape: f32[6,16,16], index: 1, kind: input, shape index: {}]   ;;  %s2520_s2 = inlined_call_operand.hbm [shape: f32[6,16,16], index: 2, kind: input, shape index: {}]   ;;  %s2521_s3 = inlined_call_operand.vmem [shape: f32[3,8,128], index: 3, kind: output, shape index: {}]  }
   0x1   :  { %10 = vsyncpa [#allocation3 + $0x1], 0 }
   0x2   :  { %11 = vsyncpa [#allocation5], 0 }
   0x3   :  { %13 = vsyncpa [#allocation5 + $0x1], 0  ;;  %s1647_s12 = smov 0   ;;  %s1649_s13 = smov 0  }
   0x4   :  { %s1651_s14 = smov 0   ;;  %s1653_s15 = smov 0  }
   0x5 LB: > { %s1666_s16 = sadd.s32 4294967295, %s1610_s15   ;;  %s1669_s17 = sadd.s32 1, %s1610_s15   ;;  %s1610_s15 = sphi %s1653_s15, %s2558_s15   ;;  %s1606_s14 = sphi %s1651_s14, %s2557_s14   ;;  %s1602_s13 = sphi %s1649_s13, %s2556_s13   ;;  %s1598_s12 = sphi %s1647_s12, %s2555_s12  }
   0x6   : > { %s23_s18 = ssub.s32 %s1610_s15, %s1669_s17  ;;  %s26_s19 = sadd.s32 1, %s1606_s14 }
   0x7   : > { %p24_p0 = scmp.eq.s32.totalorder %s23_s18, 0  ;;  %p33_p1 = scmp.ne.s32.totalorder %s1606_s14, %s1602_s13 }
   0x8   : > { %p34_p2 = scmp.eq.s32.totalorder %s1610_s15, 0  ;;  %p39_p3 = scmp.ne.s32.totalorder %s1602_s13, %s1598_s12 }
   0x9   : > { %s1679_s20 = scalar_select %p24_p0, %s1606_s14, %s26_s19  }
   0xa   : > { %p35_p4 = por %p34_p2, %p33_p1  ;;  %p40_p5 = scmp.eq.s32.totalorder %s1666_s16, 0 }
   0xb   : > { %p1408_p6 = scmp.lt.s32.totalorder %s1610_s15, 3  ;;  %s141_s22 = sand.u32 1, %s1606_s14  }
   0xc   : > { %p1683_p7 = por %p40_p5, %p39_p3  ;;  %s1690_s23 = sshll.u32 %s141_s22, 5 }
   0xd   : > { %s1693_s24 = sshll.u32 %s1610_s15, 9  ;;  %p1695_p8 = pnand %p1408_p6, %p35_p4 }
   0xe   : > { %s2524_s21 = scalar_select %p1683_p7, 1, 0 }
   0xf   : > { %s163_s26 = sand.u32 1, %s1610_s15   ;;  %s1704_s29 = scalar_lea.hbm %s2519_s1, %s1693_s24 }
  0x10   : > { %s167_s30 = scalar_lea.vmem [#allocation4], %s1690_s23  ;;  %s1711_s5 = scalar_lea.sflag [#allocation5], %s163_s26 }
  0x11   : > { %s175_s4 = sshll.u32 %s167_s30, 4  ;;  %s1488_s6 = scalar_lea.hbm %s1704_s29, 512  ;;  %s1708_s4 = int_to_ptr.vmem [resolvable:$true] %s175_s4 }
  0x12   : > { %p1489_p11 = scmp.ne.s32.totalorder %s1704_s29, %s1488_s6  ;;  %p1717_p12 = pneg %p1695_p8 }
  0x13   : > { %s1493_s10 = scalar_lea.hbm %s2519_s1, 1536  ;;  %p1494_p1 = scmp.lt.s32.totalorder %s1704_s29, %s2519_s1 }
  0x14   : > { %p1491_p13 = pnand %p1717_p12, %p1489_p11  ;;  %p1495_p2 = scmp.lt.s32.totalorder %s1493_s10, %s1488_s6 }
  0x16   : > { %p1492_p0 = pneg %p1491_p13  ;;  %p1496_p3 = por %p1495_p2, %p1494_p1 }
  0x18   : > { %p1497_p4 = pnand %p1496_p3, %p1492_p0 }
  0x1a   : > { %1500 = shalt.err (!%p1497_p4)
}
  0x1b   : > { %s1501_s18 = scalar_lea.vmem %s1708_s4, 512  ;;  %s1612_s19 = smov [#allocation4]  }
  0x1c   : > { %p1502_p5 = scmp.ne.s32.totalorder %s1708_s4, %s1501_s18  ;;  %s1506_s26 = sshll.u32 %s1612_s19, 4  ;;  %s1507_s26 = int_to_ptr.vmem [resolvable:$false] %s1506_s26 }
  0x1d   : > { %s1508_s27 = scalar_lea.vmem %s1507_s26, 1024  ;;  %p1509_p13 = scmp.lt.s32.totalorder %s1708_s4, %s1507_s26 }
  0x1e   : > { %p1504_p6 = pnand %p1502_p5, %p1717_p12  ;;  %p1510_p9 = scmp.lt.s32.totalorder %s1508_s27, %s1501_s18 }
  0x20   : > { %p1505_p11 = pneg %p1504_p6  ;;  %p1511_p10 = por %p1510_p9, %p1509_p13 }
  0x22   : > { %p1512_p7 = pnand %p1511_p10, %p1505_p11 }
  0x24   : > { %1515 = shalt.err (!%p1512_p7)
}
  0x25   : > { %s1613_s28 = smov 128   ;;  %s1614_s30 = smov 8  }
  0x26   : > { %1404 = dma.hbm_to_vmem [thread:$0]  (!%p1695_p8), %s1704_s29, 512, %s1708_s4, %s1711_s5, %s1613_s28, %s1613_s28, %s1614_s30  }
  0x27   : > { %p2527_p9 = scmp.lt.s32.totalorder %s1610_s15, 4  ;;  %p2528_p7 = scmp.ge.s32.totalorder %s1610_s15, 1 }
  0x28   : > { %s1755_s10 = scalar_lea.hbm %s2518_s0, %s1693_s24  ;;  %s145_s11 = scalar_lea.vmem [#allocation2], %s1690_s23 }
  0x29   : > { %p1747_p10 = pnand %p2528_p7, %p2527_p9  ;;  %s153_s12 = sshll.u32 %s145_s11, 4  ;;  %s1758_s12 = int_to_ptr.vmem [resolvable:$true] %s153_s12 }
  0x2a   : > { %s1764_s15 = scalar_lea.hbm %s2520_s2, %s1693_s24  ;;  %s142_s4 = scalar_lea.sflag [#allocation3], %s141_s22 }
  0x2b   : > { %s2529_s6 = scalar_select %p1747_p10, 1, 0 }
  0x2c   : > { %s1516_s19 = scalar_lea.hbm %s1755_s10, 512  ;;  %s1521_s8 = scalar_lea.hbm %s2518_s0, 1536 }
  0x2d   : > { %p1517_p0 = scmp.ne.s32.totalorder %s1755_s10, %s1516_s19  ;;  %p1522_p3 = scmp.lt.s32.totalorder %s1755_s10, %s2518_s0 }
  0x2e   : > { %p1523_p4 = scmp.lt.s32.totalorder %s1521_s8, %s1516_s19 }
  0x2f   : > { %p1519_p1 = pnand %p1517_p0, %p1717_p12 }
  0x30   : > { %p1524_p5 = por %p1523_p4, %p1522_p3 }
  0x31   : > { %p1520_p2 = pneg %p1519_p1 }
  0x33   : > { %p1525_p6 = pnand %p1524_p5, %p1520_p2 }
  0x35   : > { %1528 = shalt.err (!%p1525_p6)
}
  0x36   : > { %s1529_s22 = scalar_lea.vmem %s1758_s12, 512  ;;  %s1615_s24 = smov [#allocation2]  }
  0x37   : > { %p1530_p11 = scmp.ne.s32.totalorder %s1758_s12, %s1529_s22  ;;  %s1534_s18 = sshll.u32 %s1615_s24, 4  ;;  %s1535_s18 = int_to_ptr.vmem [resolvable:$false] %s1534_s18 }
  0x38   : > { %s1536_s29 = scalar_lea.vmem %s1535_s18, 1024  ;;  %p1537_p7 = scmp.lt.s32.totalorder %s1758_s12, %s1535_s18 }
  0x39   : > { %p1532_p13 = pnand %p1530_p11, %p1717_p12  ;;  %p1538_p0 = scmp.lt.s32.totalorder %s1536_s29, %s1529_s22 }
  0x3b   : > { %p1533_p9 = pneg %p1532_p13  ;;  %p1539_p1 = por %p1538_p0, %p1537_p7 }
  0x3d   : > { %p1540_p10 = pnand %p1539_p1, %p1533_p9 }
  0x3f   : > { %1543 = shalt.err (!%p1540_p10)
}
  0x40   : > { %1401 = dma.hbm_to_vmem [thread:$0]  (!%p1695_p8), %s1755_s10, 512, %s1758_s12, %s142_s4, %s1613_s28, %s1613_s28, %s1614_s30  }
  0x41   : > { %s189_s19 = scalar_lea.vmem [#allocation6], %s1690_s23  ;;  %s1544_s27 = scalar_lea.hbm %s1764_s15, 512 }
  0x42   : > { %s197_s26 = sshll.u32 %s189_s19, 4  ;;  %p1545_p2 = scmp.ne.s32.totalorder %s1764_s15, %s1544_s27  ;;  %s198_s26 = int_to_ptr.vmem [resolvable:$true] %s197_s26 }
  0x43   : > { %s1549_s11 = scalar_lea.hbm %s2520_s2, 1536  ;;  %p1550_p4 = scmp.lt.s32.totalorder %s1764_s15, %s2520_s2 }
  0x44   : > { %p1547_p10 = pnand %p1545_p2, %p1717_p12  ;;  %p1551_p5 = scmp.lt.s32.totalorder %s1549_s11, %s1544_s27 }
  0x46   : > { %p1548_p3 = pneg %p1547_p10  ;;  %p1552_p6 = por %p1551_p5, %p1550_p4 }
  0x48   : > { %p1553_p11 = pnand %p1552_p6, %p1548_p3 }
  0x4a   : > { %1556 = shalt.err (!%p1553_p11)
}
  0x4b   : > { %s1557_s23 = scalar_lea.vmem %s198_s26, 512  ;;  %s1616_s10 = smov [#allocation6]  }
  0x4c   : > { %p1558_p13 = scmp.ne.s32.totalorder %s198_s26, %s1557_s23  ;;  %s1562_s12 = sshll.u32 %s1616_s10, 4  ;;  %s1563_s12 = int_to_ptr.vmem [resolvable:$false] %s1562_s12 }
  0x4d   : > { %s1564_s4 = scalar_lea.vmem %s1563_s12, 1024  ;;  %p1565_p0 = scmp.lt.s32.totalorder %s198_s26, %s1563_s12 }
  0x4e   : > { %p1560_p9 = pnand %p1558_p13, %p1717_p12  ;;  %p1566_p1 = scmp.lt.s32.totalorder %s1564_s4, %s1557_s23 }
  0x50   : > { %p1561_p7 = pneg %p1560_p9  ;;  %p1567_p2 = por %p1566_p1, %p1565_p0 }
  0x52   : > { %p1568_p10 = pnand %p1567_p2, %p1561_p7 }
  0x54   : > { %1571 = shalt.err (!%p1568_p10)
}
  0x55   : > { %1407 = dma.hbm_to_vmem [thread:$0]  (!%p1695_p8), %s1764_s15, 512, %s198_s26, %s1711_s5, %s1613_s28, %s1613_s28, %s1614_s30  }
  0x56   : > { %p2530_p12 = scmp.ne.s32.totalorder %s2529_s6, 0 }
  0x57   : > { %s211_s7 = sand.u32 (!%p2530_p12), 1, %s1602_s13   ;;  %p2531_p3 = scmp.ne.s32.totalorder (!%p2530_p12), %s2524_s21, 0 }
  0x58   : > { %209 = sbr.rel (%p2530_p12) target bundleno = 952 (0x3b8), region = 32  ;;  %s1337_s18 = sshll.u32 (!%p2530_p12), %s211_s7, 5 }
  0x59   : > { %s212_s29 = scalar_lea.sflag (!%p2530_p12), [#allocation3], %s211_s7  ;;  %s1815_s19 = scalar_lea.vmem (!%p2530_p12), [#allocation2], %s1337_s18 }
  0x5d   : > { %1589 = dma.done.wait (%p2531_p3), %s212_s29, 512  }
  0x5e   : > { %1591 = vsyncadd (%p2531_p3), %s212_s29, 4294966784  ;;  %s220_s25 = sand.u32 1, %s1666_s16   ;;  %s1822_s5 = scalar_lea.vmem [#allocation4], %s1337_s18 }
  0x5f   : > { %s221_s27 = scalar_lea.sflag [#allocation5], %s220_s25 }
  0x60   : > { %1593 = dma.done.wait (%p2531_p3), %s221_s27, 1024  }
  0x61   : > { %1595 = vsyncadd (%p2531_p3), %s221_s27, 4294966272  ;;  %s1828_s28 = scalar_lea.vmem [#allocation6], %s1337_s18  ;;  %s1617_s30 = smov 16   ;;  %v272_v4 = vld [vmem:[%s1815_s19] sm:$0xff]  ;;  %v273_v6 = vld [vmem:[%s1815_s19 + $0x8] sm:$0xff]  ;;  %vm336_vm8 = vcmask 1047680  }
  0x62   : > { %v1831_v0 = vld [vmem:[%s1828_s28] sm:$0xff]  ;;  %v1834_v1 = vld [vmem:[%s1828_s28 + $0x10] sm:$0xff]  ;;  %v1841_v2 = vld [vmem:[%s1828_s28 + $0x8] sm:$0xff]  ;;  %vm284_vm0 = vcmp.gt.f32.partialorder %v272_v4, 0.0  ;;  %vm285_vm2 = vcmp.gt.f32.partialorder %v273_v6, 0.0  ;;  %s1618_s21 = smov 1  }
  0x63   : > { %361 = vrot.lane.b32.xlu0 %v1831_v0, %s1617_s30  ;;  %367 = vrot.lane.b32.xlu1 %v1834_v1, %s1617_s30  ;;  %v1844_v3 = vld [vmem:[%s1828_s28 + $0x18] sm:$0xff]  ;;  %v276_v5 = vld [vmem:[%s1822_s5] sm:$0xff]  ;;  %v288_v9 = vsel %vm284_vm0, %v272_v4, 1.0  ;;  %v289_v12 = vsel %vm285_vm2, %v273_v6, 1.0  ;;  %s1619_s6 = smov 2   ;;  %s1620_s15 = smov 127  }
  0x64   : > { %vm300_vm1 = vcmp.gt.f32.partialorder %v276_v5, 0.0  ;;  %v277_v7 = vld [vmem:[%s1822_s5 + $0x8] sm:$0xff]  ;;  %v274_v8 = vld [vmem:[%s1815_s19 + $0x10] sm:$0xff]  ;;  %1468 = vlog2.f32 %v288_v9  ;;  %v275_v13 = vld [vmem:[%s1815_s19 + $0x18] sm:$0xff]  ;;  %s1621_s26 = smov 126   ;;  %s1622_s8 = smov 124  }
  0x65   : > { %v278_v10 = vld [vmem:[%s1822_s5 + $0x10] sm:$0xff]  ;;  %v304_v11 = vsel %vm300_vm1, %v276_v5, 1.0  ;;  %vm301_vm3 = vcmp.gt.f32.partialorder %v277_v7, 0.0  ;;  %vm286_vm4 = vcmp.gt.f32.partialorder %v274_v8, 0.0  ;;  %v279_v15 = vld [vmem:[%s1822_s5 + $0x18] sm:$0xff]  ;;  %vm287_vm6 = vcmp.gt.f32.partialorder %v275_v13, 0.0 }
  0x66   : > { %vm302_vm5 = vcmp.gt.f32.partialorder %v278_v10, 0.0  ;;  %1470 = vlog2.f32 %v304_v11  ;;  %v305_v14 = vsel %vm301_vm3, %v277_v7, 1.0  ;;  %v290_v16 = vsel %vm286_vm4, %v274_v8, 1.0  ;;  %s1623_s9 = smov 120   ;;  %s1624_s11 = smov 4  }
  0x67   : > { %364 = vrot.lane.b32.xlu0 %v1841_v2, %s1617_s30  ;;  %370 = vrot.lane.b32.xlu1 %v1844_v3, %s1617_s30  ;;  %1472 = vlog2.f32 %v289_v12  ;;  %v306_v17 = vsel %vm302_vm5, %v278_v10, 1.0  ;;  %vm303_vm7 = vcmp.gt.f32.partialorder %v279_v15, 0.0  ;;  %v291_v18 = vsel %vm287_vm6, %v275_v13, 1.0  ;;  %s1626_s22 = smov 8   ;;  %p268_p8 = scmp.lt.s32.totalorder %s1666_s16, 2 }
  0x68   : > { %1474 = vlog2.f32 %v305_v14  ;;  %v307_v19 = vsel %vm303_vm7, %v279_v15, 1.0  ;;  %v324_v8 = vlaneseq }
  0x69   : > { %1476 = vlog2.f32 %v290_v16  ;;  %s2560_s16 = smov (!%p268_p8, %s1666_s16), 2 }
  0x6a   : > { %1478 = vlog2.f32 %v306_v17  ;;  %v1931_v9 = vshrl.u32 %v324_v8, 7  ;;  %v1933_v10 = vand.u32 127, %v324_v8 }
  0x6b   : > { %1480 = vlog2.f32 %v291_v18  ;;  %v1625_v18 = vmov 0.0  }
  0x6c   : > { %1482 = vlog2.f32 %v307_v19  ;;  %v1938_v11 = vadd.s32 8, %v1931_v9  ;;  %v571_v12 = vand.u32 1, %v1931_v9  ;;  %v575_v13 = vand.u32 1, %v1933_v10 }
  0x6d   : > { %vm585_vm13 = vcmp.lt.s32.totalorder %v1933_v10, 14  ;;  %vm385_vm1 = vcmp.lt.s32.totalorder %v1933_v10, 15  ;;  %vm795_vm6 = vcmp.lt.s32.totalorder %v1933_v10, 12 }
  0x6e   : > { %v572_v14 = vand.u32 1, %v1938_v11  ;;  %vm1945_vm9 = vcmp.eq.s32.totalorder %v571_v12, 0  ;;  %vm1949_vm10 = vcmp.eq.s32.totalorder %v575_v13, 0  ;;  %v992_v8 = vand.u32 7, %v1938_v11 }
  0x6f   : > { %vm2523_vm12 = vmand %vm1945_vm9, %vm1949_vm10 }
  0x70   : > { %vm574_vm11 = vcmp.eq.s32.totalorder %v572_v14, 0  ;;  %vm588_vm15 = vmand %vm2523_vm12, %vm585_vm13 }
  0x71   : > { %v1469_v20 = vpop.eup %1468  ;;  %vm1962_vm14 = vmand %vm574_vm11, %vm1949_vm10  ;;  %v1343_v19 = vsel %vm588_vm15, 1.0, %v1625_v18 }
  0x72   : > { %v293_v24 = vmul.f32 0.6931472, %v1469_v20  ;;  %vm589_vm0 = vmand %vm1962_vm14, %vm585_vm13  ;;  %v2305_v16 = vsel %vm1962_vm14, 1.0, %v1625_v18 }
  0x73   : > { %v1471_v21 = vpop.eup %1470  ;;  %v1344_v20 = vsel %vm589_vm0, 1.0, %v1625_v18 }
  0x74   : > { %v1473_v22 = vpop.eup %1472  ;;  %v309_v25 = vmul.f32 0.6931472, %v1471_v21  ;;  %v781_v21 = vand.u32 3, %v1931_v9 }
  0x75   : > { %v1475_v23 = vpop.eup %1474  ;;  %v295_v32 = vmul.f32 0.6931472, %v1473_v22  ;;  %v785_v22 = vand.u32 3, %v1933_v10 }
  0x76   : > { %v1477_v26 = vpop.eup %1476  ;;  %v316_v31 = vsub.f32 %v293_v24, %v309_v25  ;;  %v311_v34 = vmul.f32 0.6931472, %v1475_v23  ;;  %v1453_v23 = vpack.i.bf16 %v1344_v20, %v1343_v19  ;;  %v782_v24 = vand.u32 3, %v1938_v11 }
  0x77   : > { %v1479_v27 = vpop.eup %1478  ;;  %v297_v35 = vmul.f32 0.6931472, %v1477_v26  ;;  %v1341_v25 = vsel %vm385_vm1, 1.0, %v1625_v18  ;;  %vm1991_vm2 = vcmp.eq.s32.totalorder %v781_v21, 0  ;;  %vm1995_vm3 = vcmp.eq.s32.totalorder %v785_v22, 0 }
  0x78   : > { %v1481_v33 = vpop.eup %1480  ;;  %v313_v36 = vmul.f32 0.6931472, %v1479_v27  ;;  %v1866_v42 = vmul.f32 %v316_v31, %v1831_v0  ;;  %v317_v43 = vsub.f32 %v295_v32, %v311_v34  ;;  %vm784_vm4 = vcmp.eq.s32.totalorder %v782_v24, 0  ;;  %vm793_vm5 = vmand %vm1991_vm2, %vm1995_vm3 }
  0x79   : > { %v1483_v37 = vpop.eup %1482  ;;  %v299_v45 = vmul.f32 0.6931472, %v1481_v33  ;;  %vm2008_vm7 = vmand %vm784_vm4, %vm1995_vm3  ;;  %vm2089_vm1 = vcmp.eq.s32.totalorder %v992_v8, 0  ;;  %vm923_vm2 = vcmp.lt.s32.totalorder %v1938_v11, 12 }
  0x7a   : > { %v318_v44 = vsub.f32 %v297_v35, %v313_v36  ;;  %v315_v46 = vmul.f32 0.6931472, %v1483_v37  ;;  %v1876_v48 = vmul.f32 %v317_v43, %v1841_v2  ;;  %vm798_vm11 = vmand %vm793_vm5, %vm795_vm6 }
  0x7b   : > { %vm799_vm13 = vmand %vm2008_vm7, %vm795_vm6  ;;  %vm1005_vm6 = vcmp.lt.s32.totalorder %v1933_v10, 8 }
  0x7c   : > { %v1879_v49 = vmul.f32 %v318_v44, %v1834_v1  ;;  %v319_v50 = vsub.f32 %v299_v45, %v315_v46  ;;  %vm2550_vm3 = vmand %vm1945_vm9, %vm1949_vm10  ;;  %vm699_vm9 = vcmp.lt.s32.totalorder %v1931_v9, 6  ;;  %vm513_vm10 = vcmp.lt.s32.totalorder %v1938_v11, 15 }
  0x7e   : > { %v1886_v51 = vmul.f32 %v319_v50, %v1844_v3 }
  0xd5   : > { %v362_v28 = vpop.permute.xlu0 %361  ;;  %v368_v29 = vpop.permute.xlu1 %367 }
  0xd6   : > { %v363_v30 = vsel %vm336_vm8, %v362_v28, %v1831_v0  ;;  %v369_v38 = vsel %vm336_vm8, %v368_v29, %v1834_v1  ;;  %v1349_v29 = vsel %vm798_vm11, 1.0, %v1625_v18 }
  0xd7   : > { %373 = vrot.lane.b32.xlu0 %v363_v30, %s1617_s30  ;;  %v1350_v30 = vsel %vm799_vm13, 1.0, %v1625_v18 }
  0xd8   : > { %v1458_v31 = vpack.i.bf16 %v1350_v30, %v1349_v29 }
  0xd9   : > { %v365_v39 = vpop.permute.xlu0 %364  ;;  %v371_v40 = vpop.permute.xlu1 %370 }
  0xda   : > { %v366_v41 = vsel %vm336_vm8, %v365_v39, %v1841_v2  ;;  %v372_v47 = vsel %vm336_vm8, %v371_v40, %v1844_v3 }
  0xdb   : > { %377 = vrot.lane.b32.xlu0 %v369_v38, %s1617_s30  ;;  %375 = vrot.lane.b32.xlu1 %v366_v41, %s1617_s30 }
  0xdf   : > { %379 = vrot.lane.b32.xlu1 %v372_v47, %s1617_s30  ;;  %337 = vrot.lane.b32.xlu0 %v1866_v42, %s1617_s30 }
  0xe3   : > { %340 = vrot.lane.b32.xlu1 %v1876_v48, %s1617_s30  ;;  %343 = vrot.lane.b32.xlu0 %v1879_v49, %s1617_s30 }
  0xe7   : > { %346 = vrot.lane.b32.xlu1 %v1886_v51, %s1617_s30  ;;  %394 = vrot.lane.b32.xlu0 %v1866_v42, %s1618_s21 }
  0xeb   : > { %396 = vrot.lane.b32.xlu1 %v1876_v48, %s1618_s21  ;;  %594 = vrot.lane.b32.xlu0 %v1866_v42, %s1619_s6 }
  0xef   : > { %398 = vrot.lane.b32.xlu1 %v1879_v49, %s1618_s21 }
  0xf3   : > { %596 = vrot.lane.b32.xlu1 %v1876_v48, %s1619_s6 }
  0xf7   : > { %400 = vrot.lane.b32.xlu1 %v1886_v51, %s1618_s21 }
 0x149   : > { %v374_v52 = vpop.permute.xlu0 %373 }
 0x14a   : > { %v381_v5 = vsel %vm336_vm8, %v374_v52, %v1831_v0 }
 0x14d   : > { %v376_v53 = vpop.permute.xlu1 %375  ;;  %v378_v54 = vpop.permute.xlu0 %377 }
 0x14e   : > { %v382_v63 = vsel %vm336_vm8, %v376_v53, %v1841_v2  ;;  %v383_v6 = vsel %vm336_vm8, %v378_v54, %v1834_v1 }
 0x151   : > { %v380_v55 = vpop.permute.xlu1 %379  ;;  %v338_v56 = vpop.permute.xlu0 %337 }
 0x152   : > { %v339_v57 = vsel %vm336_vm8, %v338_v56, %v1866_v42  ;;  %v384_v7 = vsel %vm336_vm8, %v380_v55, %v1844_v3 }
 0x153   : > { %349 = vrot.lane.b32.xlu0 %v339_v57, %s1617_s30 }
 0x155   : > { %v341_v58 = vpop.permute.xlu1 %340  ;;  %v344_v59 = vpop.permute.xlu0 %343 }
 0x156   : > { %v342_v60 = vsel %vm336_vm8, %v341_v58, %v1876_v48  ;;  %v345_v61 = vsel %vm336_vm8, %v344_v59, %v1879_v49 }
 0x157   : > { %351 = vrot.lane.b32.xlu1 %v342_v60, %s1617_s30  ;;  %353 = vrot.lane.b32.xlu0 %v345_v61, %s1617_s30 }
 0x159   : > { %v347_v62 = vpop.permute.xlu1 %346  ;;  %v2036_v34 = vpop.permute.xlu0 %394 }
 0x15a   : > { %v348_v4 = vsel %vm336_vm8, %v347_v62, %v1886_v51 }
 0x15b   : > { %420 = vrot.lane.b32.xlu1 %v382_v63, %s1620_s15  ;;  %355 = vrot.lane.b32.xlu0 %v348_v4, %s1617_s30 }
 0x15d   : > { %v2032_v32 = vpop.permute.xlu1 %396  ;;  %v2040_v36 = vpop.permute.xlu0 %594 }
 0x15f   : > { %614 = vrot.lane.b32.xlu1 %v381_v5, %s1621_s26  ;;  %418 = vrot.lane.b32.xlu0 %v381_v5, %s1620_s15 }
 0x161   : > { %v2034_v33 = vpop.permute.xlu1 %398 }
 0x163   : > { %424 = vrot.lane.b32.xlu1 %v384_v7, %s1620_s15  ;;  %422 = vrot.lane.b32.xlu0 %v383_v6, %s1620_s15 }
 0x165   : > { %v2038_v35 = vpop.permute.xlu1 %596 }
 0x167   : > { %824 = vrot.lane.b32.xlu1 %v381_v5, %s1622_s8  ;;  %616 = vrot.lane.b32.xlu0 %v382_v63, %s1621_s26 }
 0x169   : > { %v2042_v37 = vpop.permute.xlu1 %400 }
 0x16b   : > { %620 = vrot.lane.b32.xlu1 %v384_v7, %s1621_s26  ;;  %618 = vrot.lane.b32.xlu0 %v383_v6, %s1621_s26 }
 0x16f   : > { %1034 = vrot.lane.b32.xlu1 %v381_v5, %s1623_s9  ;;  %826 = vrot.lane.b32.xlu0 %v382_v63, %s1622_s8 }
 0x173   : > { %830 = vrot.lane.b32.xlu1 %v384_v7, %s1622_s8  ;;  %828 = vrot.lane.b32.xlu0 %v383_v6, %s1622_s8 }
 0x177   : > { %1040 = vrot.lane.b32.xlu1 %v384_v7, %s1623_s9  ;;  %1036 = vrot.lane.b32.xlu0 %v382_v63, %s1623_s9  ;;  %v995_v7 = vand.u32 7, %v1933_v10 }
 0x179   : > { %vm2083_vm0 = vcmp.eq.s32.totalorder %v995_v7, 0 }
 0x17a   : > { %vm1004_vm11 = vmand %vm2089_vm1, %vm2083_vm0 }
 0x17b   : > { %804 = vrot.lane.b32.xlu1 %v1866_v42, %s1624_s11  ;;  %1038 = vrot.lane.b32.xlu0 %v383_v6, %s1623_s9  ;;  %v991_v6 = vand.u32 7, %v1931_v9  ;;  %vm1009_vm12 = vmand %vm1004_vm11, %vm1005_vm6 }
 0x17d   : > { %vm2079_vm15 = vcmp.eq.s32.totalorder %v991_v6, 0 }
 0x17e   : > { %vm1003_vm4 = vmand %vm2079_vm15, %vm2083_vm0  ;;  %vm499_vm15 = vcmp.lt.s32.totalorder %v1931_v9, 7  ;;  %vm713_vm0 = vcmp.lt.s32.totalorder %v1938_v11, 14 }
 0x17f   : > { %600 = vrot.lane.b32.xlu1 %v1886_v51, %s1619_s6  ;;  %598 = vrot.lane.b32.xlu0 %v1879_v49, %s1619_s6  ;;  %vm1008_vm13 = vmand %vm1003_vm4, %vm1005_vm6  ;;  %vm1187_vm6 = vcmp.eq.s32.totalorder %v1931_v9, 1 }
 0x180   : > { %vm719_vm1 = vmand %vm1962_vm14, %vm713_vm0  ;;  %vm1182_vm14 = vcmp.eq.s32.totalorder %v1931_v9, 0 }
 0x183   : > { %1014 = vrot.lane.b32.xlu1 %v1866_v42, %s1626_s22  ;;  %806 = vrot.lane.b32.xlu0 %v1876_v48, %s1624_s11 }
 0x187   : > { %1454 = vrot.lane.b32.xlu1 %v1453_v23, %s1619_s6  ;;  %455 = vrot.lane.b32.xlu0 %v1341_v25, %s1618_s21 }
 0x18b   : > { %1018 = vrot.lane.b32.xlu1 %v1879_v49, %s1626_s22  ;;  %808 = vrot.lane.b32.xlu0 %v1879_v49, %s1624_s11 }
 0x18f   : > { %1020 = vrot.lane.b32.xlu1 %v1886_v51, %s1626_s22  ;;  %1016 = vrot.lane.b32.xlu0 %v1876_v48, %s1626_s22 }
 0x193   : > { %810 = vrot.lane.b32.xlu0 %v1886_v51, %s1624_s11 }
 0x197   : > { %1459 = vrot.lane.b32.xlu0 %v1458_v31, %s1624_s11 }
 0x1c5   : > { %v350_v38 = vpop.permute.xlu0 %349 }
 0x1c6   : > { %v2046_v39 = vsel %vm336_vm8, %v350_v38, %v1866_v42 }
 0x1c7   : > { %v606_v40 = vsub.f32 %v2046_v39, %v2040_v36 }
 0x1c9   : > { %v2050_v41 = vpop.permute.xlu1 %351  ;;  %v2052_v43 = vpop.permute.xlu0 %353 }
 0x1ca   : > { %v2144_v7 = vsel %vm336_vm8, %v2050_v41, %v1876_v48 }
 0x1cd   : > { %v421_v44 = vpop.permute.xlu1 %420  ;;  %v356_v45 = vpop.permute.xlu0 %355 }
 0x1ce   : > { %v431_v46 = vmul.f32 %v421_v44, %v1841_v2  ;;  %v2057_v47 = vsel %vm336_vm8, %v356_v45, %v1886_v51  ;;  %v1355_v45 = vsel %vm1008_vm13, 1.0, %v1625_v18 }
 0x1cf   : > { %v409_v50 = vsub.f32 %v2057_v47, %v2042_v37 }
 0x1d0   : > { %440 = vrot.lane.b32.xlu1 %v431_v46, %s1618_s21  ;;  %v1356_v46 = vsel %vm1009_vm12, 1.0, %v1625_v18  ;;  %vm329_vm12 = vcmask 130048  }
 0x1d1   : > { %v615_v52 = vpop.permute.xlu1 %614  ;;  %v419_v53 = vpop.permute.xlu0 %418 }
 0x1d2   : > { %v430_v54 = vmul.f32 %v419_v53, %v1831_v0  ;;  %v626_v57 = vmul.f32 %v615_v52, %v1831_v0 }
 0x1d4   : > { %438 = vrot.lane.b32.xlu0 %v430_v54, %s1618_s21 }
 0x1d5   : > { %v425_v55 = vpop.permute.xlu1 %424  ;;  %v423_v56 = vpop.permute.xlu0 %422 }
 0x1d6   : > { %v432_v58 = vmul.f32 %v423_v56, %v1834_v1  ;;  %v433_v4 = vmul.f32 %v425_v55, %v1844_v3  ;;  %v1463_v55 = vpack.i.bf16 %v1356_v46, %v1355_v45 }
 0x1d8   : > { %634 = vrot.lane.b32.xlu0 %v626_v57, %s1619_s6  ;;  %442 = vrot.lane.b32.xlu1 %v432_v58, %s1618_s21 }
 0x1d9   : > { %v825_v59 = vpop.permute.xlu1 %824  ;;  %v617_v60 = vpop.permute.xlu0 %616 }
 0x1da   : > { %v627_v61 = vmul.f32 %v617_v60, %v1841_v2  ;;  %v836_v13 = vmul.f32 %v825_v59, %v1831_v0 }
 0x1dc   : > { %636 = vrot.lane.b32.xlu1 %v627_v61, %s1619_s6 }
 0x1dd   : > { %v621_v62 = vpop.permute.xlu1 %620  ;;  %v619_v63 = vpop.permute.xlu0 %618 }
 0x1de   : > { %v628_v5 = vmul.f32 %v619_v63, %v1834_v1  ;;  %v629_v24 = vmul.f32 %v621_v62, %v1844_v3 }
 0x1e0   : > { %444 = vrot.lane.b32.xlu1 %v433_v4, %s1618_s21  ;;  %638 = vrot.lane.b32.xlu0 %v628_v5, %s1619_s6  ;;  %s1340_s21 = sshll.u32 %s2560_s16, 3 }
 0x1e1   : > { %v827_v12 = vpop.permute.xlu0 %826  ;;  %v1035_v19 = vpop.permute.xlu1 %1034 }
 0x1e2   : > { %v837_v14 = vmul.f32 %v827_v12, %v1841_v2  ;;  %v1046_v31 = vmul.f32 %v1035_v19, %v1831_v0  ;;  %v407_v12 = vsub.f32 %v2144_v7, %v2032_v32 }
 0x1e4   : > { %844 = vrot.lane.b32.xlu1 %v836_v13, %s1624_s11  ;;  %846 = vrot.lane.b32.xlu0 %v837_v14, %s1624_s11  ;;  %v411_v19 = vand.u32 2147483647, %v407_v12 }
 0x1e5   : > { %v829_v23 = vpop.permute.xlu0 %828  ;;  %v831_v29 = vpop.permute.xlu1 %830 }
 0x1e6   : > { %v838_v25 = vmul.f32 %v829_v23, %v1834_v1  ;;  %v839_v52 = vmul.f32 %v831_v29, %v1844_v3  ;;  %v406_v23 = vsub.f32 %v2046_v39, %v2036_v34  ;;  %v610_v34 = vand.u32 2147483647, %v606_v40 }
 0x1e8   : > { %640 = vrot.lane.b32.xlu0 %v629_v24, %s1619_s6  ;;  %848 = vrot.lane.b32.xlu1 %v838_v25, %s1624_s11  ;;  %v2159_v24 = vsel %vm336_vm8, %v2052_v43, %v1879_v49  ;;  %v607_v43 = vsub.f32 %v2144_v7, %v2038_v35  ;;  %vm909_vm8 = vcmp.lt.s32.totalorder %v1931_v9, 4 }
 0x1e9   : > { %v1037_v30 = vpop.permute.xlu0 %1036  ;;  %v1041_v54 = vpop.permute.xlu1 %1040  ;;  %v408_v32 = vsub.f32 %v2159_v24, %v2034_v33 }
 0x1ea   : > { %v1047_v38 = vmul.f32 %v1037_v30, %v1841_v2  ;;  %v1049_v56 = vmul.f32 %v1041_v54, %v1844_v3  ;;  %v410_v30 = vand.u32 2147483647, %v406_v23 }
 0x1eb   : > { %v412_v45 = vand.u32 2147483647, %v408_v32 }
 0x1ec   : > { %1054 = vrot.lane.b32.xlu0 %v1046_v31, %s1626_s22  ;;  %1056 = vrot.lane.b32.xlu1 %v1047_v38, %s1626_s22 }
 0x1ed   : > { %v1039_v44 = vpop.permute.xlu0 %1038  ;;  %v805_v58 = vpop.permute.xlu1 %804 }
 0x1ee   : > { %v1048_v53 = vmul.f32 %v1039_v44, %v1834_v1  ;;  %v816_v35 = vsub.f32 %v2046_v39, %v805_v58 }
 0x1f0   : > { %850 = vrot.lane.b32.xlu0 %v839_v52, %s1624_s11  ;;  %1058 = vrot.lane.b32.xlu1 %v1048_v53, %s1626_s22 }
 0x1f1   : > { %v599_v57 = vpop.permute.xlu0 %598  ;;  %v2129_v60 = vpop.permute.xlu1 %600 }
 0x1f2   : > { %v608_v33 = vsub.f32 %v2159_v24, %v599_v57  ;;  %v413_v57 = vand.u32 2147483647, %v409_v50 }
 0x1f4   : > { %1464 = vrot.lane.b32.xlu0 %v1463_v55, %s1626_s22  ;;  %1060 = vrot.lane.b32.xlu1 %v1049_v56, %s1626_s22 }
 0x1f5   : > { %v807_v59 = vpop.permute.xlu0 %806  ;;  %v2131_v62 = vpop.permute.xlu1 %1014 }
 0x1f9   : > { %v456_v61 = vpop.permute.xlu0 %455  ;;  %v2135_v4 = vpop.permute.xlu1 %1454 }
 0x1fa   : > { %v1456_v53 = vunpack.i.l.bf16 %v2135_v4  ;;  %v1457_v36 = vunpack.i.h.bf16 %v2135_v4  ;;  %v820_v4 = vand.u32 2147483647, %v816_v35 }
 0x1fd   : > { %v2133_v63 = vpop.permute.xlu0 %808  ;;  %v2139_v6 = vpop.permute.xlu1 %1018 }
 0x1fe   : > { %v818_v58 = vsub.f32 %v2159_v24, %v2133_v63 }
 0x201   : > { %v2137_v5 = vpop.permute.xlu0 %1016  ;;  %v2150_v13 = vpop.permute.xlu1 %1020 }
 0x205   : > { %v2146_v8 = vpop.permute.xlu0 %810 }
 0x209   : > { %v2152_v14 = vpop.permute.xlu0 %1459 }
 0x20a   : > { %v1462_v37 = vunpack.i.h.bf16 %v2152_v14  ;;  %v1461_v50 = vunpack.i.l.bf16 %v2152_v14 }
 0x242   : > { %v441_v41 = vpop.permute.xlu1 %440 }
 0x243   : > { %v451_v25 = vmul.f32 %v441_v41, %v411_v19  ;;  %v611_v19 = vand.u32 2147483647, %v607_v43  ;;  %v612_v41 = vand.u32 2147483647, %v608_v33 }
 0x245   : > { %v459_v29 = vmul.f32 %v456_v61, %v451_v25  ;;  %v817_v25 = vsub.f32 %v2144_v7, %v807_v59 }
 0x246   : > { %v439_v31 = vpop.permute.xlu0 %438 }
 0x247   : > { %v450_v38 = vmul.f32 %v439_v31, %v410_v30  ;;  %468 = vrot.lane.b32.xlu1 %v459_v29, %s1620_s15 }
 0x249   : > { %v458_v44 = vmul.f32 %v456_v61, %v450_v38 }
 0x24a   : > { %v443_v46 = vpop.permute.xlu1 %442  ;;  %v635_v52 = vpop.permute.xlu0 %634 }
 0x24b   : > { %v452_v54 = vmul.f32 %v443_v46, %v412_v45  ;;  %v646_v55 = vmul.f32 %v635_v52, %v610_v34  ;;  %466 = vrot.lane.b32.xlu0 %v458_v44, %s1620_s15  ;;  %v609_v44 = vsub.f32 %v2057_v47, %v2129_v60  ;;  %v821_v45 = vand.u32 2147483647, %v817_v25 }
 0x24c   : > { %v822_v60 = vand.u32 2147483647, %v818_v58  ;;  %v1028_v25 = vsub.f32 %v2159_v24, %v2139_v6 }
 0x24d   : > { %v460_v56 = vmul.f32 %v456_v61, %v452_v54  ;;  %v658_v12 = vmul.f32 %v1456_v53, %v646_v55  ;;  %v613_v55 = vand.u32 2147483647, %v609_v44  ;;  %v333_v44 = vsel %vm329_vm12, %v1841_v2, 0.0 }
 0x24e   : > { %v637_v23 = vpop.permute.xlu1 %636  ;;  %v1032_v6 = vand.u32 2147483647, %v1028_v25 }
 0x24f   : > { %v647_v40 = vmul.f32 %v637_v23, %v611_v19  ;;  %470 = vrot.lane.b32.xlu0 %v460_v56, %s1620_s15  ;;  %666 = vrot.lane.b32.xlu1 %v658_v12, %s1621_s26 }
 0x251   : > { %v659_v29 = vmul.f32 %v1457_v36, %v647_v40 }
 0x252   : > { %v445_v30 = vpop.permute.xlu1 %444  ;;  %v639_v32 = vpop.permute.xlu0 %638 }
 0x253   : > { %v453_v31 = vmul.f32 %v445_v30, %v413_v57  ;;  %v648_v38 = vmul.f32 %v639_v32, %v612_v41  ;;  %668 = vrot.lane.b32.xlu0 %v659_v29, %s1621_s26  ;;  %v1026_v41 = vsub.f32 %v2046_v39, %v2131_v62  ;;  %v1027_v29 = vsub.f32 %v2144_v7, %v2137_v5 }
 0x254   : > { %v819_v57 = vsub.f32 %v2057_v47, %v2146_v8  ;;  %v907_v30 = vrot.slane %v1876_v48, 4  ;;  %v2212_v39 = vsel %vm793_vm5, 1.0, %v1625_v18  ;;  %v2220_v62 = vsel %vm1003_vm4, 1.0, %v1625_v18  ;;  %vm929_vm5 = vmand %vm2008_vm7, %vm923_vm2 }
 0x255   : > { %v461_v59 = vmul.f32 %v456_v61, %v453_v31  ;;  %v660_v34 = vmul.f32 %v1456_v53, %v648_v38  ;;  %v1030_v5 = vand.u32 2147483647, %v1026_v41  ;;  %v1029_v7 = vsub.f32 %v2057_v47, %v2150_v13 }
 0x256   : > { %v845_v43 = vpop.permute.xlu1 %844  ;;  %v847_v46 = vpop.permute.xlu0 %846  ;;  %v1031_v8 = vand.u32 2147483647, %v1027_v29  ;;  %v823_v27 = vand.u32 2147483647, %v819_v57  ;;  %v330_v38 = vsel %vm329_vm12, %v1831_v0, 0.0  ;;  %v334_v47 = vsel %vm329_vm12, %v1844_v3, 0.0 }
 0x257   : > { %v856_v52 = vmul.f32 %v845_v43, %v820_v4  ;;  %v857_v54 = vmul.f32 %v847_v46, %v821_v45  ;;  %472 = vrot.lane.b32.xlu1 %v461_v59, %s1620_s15  ;;  %670 = vrot.lane.b32.xlu0 %v660_v34, %s1621_s26  ;;  %v331_v4 = vsel %vm329_vm12, %v1834_v1, 0.0  ;;  %v906_v43 = vrot.slane %v1879_v49, 4 }
 0x258   : > { %v908_v46 = vrot.slane %v1886_v51, 4 }
 0x259   : > { %v868_v33 = vmul.f32 %v1461_v50, %v856_v52  ;;  %v869_v63 = vmul.f32 %v1462_v37, %v857_v54 }
 0x25a   : > { %v849_v61 = vpop.permute.xlu1 %848  ;;  %v641_v53 = vpop.permute.xlu0 %640  ;;  %v911_v22 = vsel %vm909_vm8, %v906_v43, %v908_v46  ;;  %v913_v21 = vsel %vm909_vm8, %v908_v46, %v906_v43  ;;  %v504_v43 = vrot.slane %v1831_v0, 1  ;;  %v506_v46 = vrot.slane %v1841_v2, 1 }
 0x25b   : > { %v858_v56 = vmul.f32 %v849_v61, %v822_v60  ;;  %v649_v12 = vmul.f32 %v641_v53, %v613_v55  ;;  %878 = vrot.lane.b32.xlu0 %v869_v63, %s1622_s8  ;;  %876 = vrot.lane.b32.xlu1 %v868_v33, %s1622_s8  ;;  %v2239_v55 = vadd.f32 %v331_v4, %v330_v38  ;;  %v916_v63 = vrot.slane %v1841_v2, 4 }
 0x25c   : > { %v2241_v60 = vadd.f32 %v334_v47, %v333_v44 }
 0x25d   : > { %v870_v19 = vmul.f32 %v1461_v50, %v858_v56  ;;  %v661_v23 = vmul.f32 %v1457_v36, %v649_v12  ;;  %v905_v36 = vrot.slane %v1866_v42, 4  ;;  %v914_v50 = vrot.slane %v1831_v0, 4 }
 0x25e   : > { %v1057_v40 = vpop.permute.xlu1 %1056  ;;  %v1055_v35 = vpop.permute.xlu0 %1054  ;;  %v1359_v56 = vsel %vm1004_vm11, 1.0, %v1625_v18  ;;  %v1033_v12 = vand.u32 2147483647, %v1029_v7  ;;  %vm1191_vm11 = vcmp.eq.s32.totalorder %v1933_v10, 1 }
 0x25f   : > { %880 = vrot.lane.b32.xlu0 %v870_v19, %s1622_s8  ;;  %672 = vrot.lane.b32.xlu1 %v661_v23, %s1621_s26  ;;  %v910_v24 = vsel %vm909_vm8, %v905_v36, %v907_v30  ;;  %v912_v31 = vsel %vm909_vm8, %v907_v30, %v905_v36  ;;  %v1067_v13 = vmul.f32 %v1057_v40, %v1031_v8  ;;  %v915_v36 = vrot.slane %v1834_v1, 4  ;;  %vm1195_vm2 = vmand %vm1187_vm6, %vm1191_vm11 }
 0x260   : > { %v1066_v45 = vmul.f32 %v1055_v35, %v1030_v5  ;;  %v934_v61 = vsub.f32 %v910_v24, %v1866_v42  ;;  %v935_v53 = vsub.f32 %v912_v31, %v1876_v48  ;;  %v1168_v23 = vmul.f32 %v2220_v62, %v2239_v55 }
 0x261   : > { %v1169_v40 = vmul.f32 %v1359_v56, %v2241_v60  ;;  %v917_v30 = vrot.slane %v1844_v3, 4  ;;  %v918_v14 = vsel %vm909_vm8, %v914_v50, %v916_v63  ;;  %v2280_v5 = vsel %vm329_vm12, %v2241_v60, 0.0 }
 0x262   : > { %v851_v32 = vpop.permute.xlu0 %850  ;;  %v1059_v26 = vpop.permute.xlu1 %1058  ;;  %v1170_v29 = vsel %vm329_vm12, %v1168_v23, 0.0  ;;  %v937_v8 = vsub.f32 %v913_v21, %v1886_v51  ;;  %v497_v24 = vrot.slane %v1876_v48, 1  ;;  %v942_v15 = vmul.f32 %v918_v14, %v1831_v0 }
 0x263   : > { %v859_v34 = vmul.f32 %v851_v32, %v823_v27  ;;  %v1068_v19 = vmul.f32 %v1059_v26, %v1032_v6  ;;  %v1171_v57 = vsel %vm329_vm12, %v1169_v40, 0.0  ;;  %v2276_v32 = vsel %vm329_vm12, %v2239_v55, 0.0 }
 0x264   : > { %v936_v6 = vsub.f32 %v911_v22, %v1879_v49  ;;  %v2283_v7 = vadd.f32 %v1171_v57, %v1170_v29  ;;  %v2291_v26 = vsel %vm2550_vm3, 1.0, %v1625_v18  ;;  %v495_v27 = vrot.slane %v1866_v42, 1 }
 0x265   : > { %v871_v35 = vmul.f32 %v1462_v37, %v859_v34  ;;  %v920_v37 = vsel %vm909_vm8, %v916_v63, %v914_v50  ;;  %v919_v38 = vsel %vm909_vm8, %v915_v36, %v917_v30  ;;  %v939_v4 = vand.u32 2147483647, %v935_v53 }
 0x266   : > { %v1465_v20 = vpop.permute.xlu0 %1464  ;;  %v1061_v33 = vpop.permute.xlu1 %1060  ;;  %v943_v44 = vmul.f32 %v920_v37, %v1841_v2  ;;  %v2313_v47 = vmul.f32 %v2291_v26, %v2239_v55  ;;  %v502_v34 = vsel %vm499_vm15, %v497_v24, %v495_v27  ;;  %v944_v50 = vmul.f32 %v919_v38, %v1834_v1 }
 0x267   : > { %v1467_v58 = vunpack.i.h.bf16 %v1465_v20  ;;  %v1466_v59 = vunpack.i.l.bf16 %v1465_v20  ;;  %v1069_v41 = vmul.f32 %v1061_v33, %v1033_v12  ;;  %v938_v20 = vand.u32 2147483647, %v934_v61 }
 0x268   : > { %v697_v33 = vrot.slane %v1876_v48, 2  ;;  %v947_v63 = vmul.f32 %v943_v44, %v939_v4  ;;  %v496_v61 = vrot.slane %v1879_v49, 1  ;;  %v498_v53 = vrot.slane %v1886_v51, 1 }
 0x269   : > { %v1079_v52 = vmul.f32 %v1467_v58, %v1067_v13  ;;  %v1078_v54 = vmul.f32 %v1466_v59, %v1066_v45  ;;  %v1080_v25 = vmul.f32 %v1466_v59, %v1068_v19  ;;  %v1081_v31 = vmul.f32 %v1467_v58, %v1069_v41 }
 0x26a   : > { %v921_v13 = vsel %vm909_vm8, %v917_v30, %v915_v36  ;;  %v2318_v45 = vsel %vm929_vm5, 1.0, %v1625_v18  ;;  %v940_v58 = vand.u32 2147483647, %v936_v6  ;;  %v2320_v59 = vand.u32 2147483647, %v937_v8  ;;  %vm2473_vm8 = vmand %vm1182_vm14, %vm1191_vm11 }
 0x26b   : > { %1088 = vrot.lane.b32.xlu0 %v1079_v52, %s1623_s9  ;;  %1086 = vrot.lane.b32.xlu1 %v1078_v54, %s1623_s9  ;;  %v946_v52 = vmul.f32 %v942_v15, %v938_v20  ;;  %v695_v54 = vrot.slane %v1866_v42, 2  ;;  %v500_v56 = vsel %vm499_vm15, %v495_v27, %v497_v24  ;;  %v505_v12 = vrot.slane %v1834_v1, 1 }
 0x26c   : > { %v507_v19 = vrot.slane %v1844_v3, 1  ;;  %v523_v23 = vsub.f32 %v502_v34, %v1876_v48  ;;  %v510_v40 = vsel %vm499_vm15, %v506_v46, %v504_v43  ;;  %v698_v22 = vrot.slane %v1886_v51, 2 }
 0x26d   : > { %v700_v21 = vsel %vm699_vm9, %v695_v54, %v697_v33  ;;  %v702_v41 = vsel %vm699_vm9, %v697_v33, %v695_v54  ;;  %v706_v29 = vrot.slane %v1841_v2, 2  ;;  %v501_v57 = vsel %vm499_vm15, %v496_v61, %v498_v53 }
 0x26e   : > { %v503_v36 = vsel %vm499_vm15, %v498_v53, %v496_v61  ;;  %v508_v30 = vsel %vm499_vm15, %v504_v43, %v506_v46  ;;  %v522_v14 = vsub.f32 %v500_v56, %v1866_v42  ;;  %v509_v37 = vsel %vm499_vm15, %v505_v12, %v507_v19 }
 0x26f   : > { %1090 = vrot.lane.b32.xlu0 %v1080_v25, %s1623_s9  ;;  %882 = vrot.lane.b32.xlu1 %v871_v35, %s1622_s8  ;;  %v696_v35 = vrot.slane %v1879_v49, 2  ;;  %v704_v25 = vrot.slane %v1831_v0, 2  ;;  %v511_v6 = vsel %vm499_vm15, %v507_v19, %v505_v12  ;;  %v527_v8 = vand.u32 2147483647, %v523_v23  ;;  %s271_s8 = scalar_lea.vmem %s2521_s3, %s1340_s21 }
 0x270   : > { %v531_v27 = vmul.f32 %v510_v40, %v1841_v2  ;;  %v1342_v24 = vsel %vm513_vm10, 1.0, %v1625_v18  ;;  %v724_v20 = vsub.f32 %v700_v21, %v1866_v42  ;;  %v725_v15 = vsub.f32 %v702_v41, %v1876_v48 }
 0x271   : > { %v705_v38 = vrot.slane %v1834_v1, 2  ;;  %v707_v4 = vrot.slane %v1844_v3, 2  ;;  %v708_v44 = vsel %vm699_vm9, %v704_v25, %v706_v29  ;;  %v710_v34 = vsel %vm699_vm9, %v706_v29, %v704_v25 }
 0x272   : > { %v524_v43 = vsub.f32 %v501_v57, %v1879_v49  ;;  %v525_v46 = vsub.f32 %v503_v36, %v1886_v51  ;;  %v526_v54 = vand.u32 2147483647, %v522_v14  ;;  %v530_v33 = vmul.f32 %v508_v30, %v1831_v0 }
 0x273   : > { %1092 = vrot.lane.b32.xlu1 %v1081_v31, %s1623_s9  ;;  %v701_v31 = vsel %vm699_vm9, %v696_v35, %v698_v22  ;;  %v535_v61 = vmul.f32 %v531_v27, %v527_v8  ;;  %v703_v53 = vsel %vm699_vm9, %v698_v22, %v696_v35  ;;  %v728_v12 = vand.u32 2147483647, %v724_v20 }
 0x274   : > { %v726_v56 = vsub.f32 %v701_v31, %v1879_v49  ;;  %v729_v19 = vand.u32 2147483647, %v725_v15  ;;  %v732_v23 = vmul.f32 %v708_v44, %v1831_v0  ;;  %v733_v40 = vmul.f32 %v710_v34, %v1841_v2 }
 0x275   : > { %v945_v21 = vmul.f32 %v921_v13, %v1844_v3  ;;  %v948_v41 = vmul.f32 %v944_v50, %v940_v58  ;;  %v950_v25 = vmul.f32 %v2212_v39, %v946_v52  ;;  %v709_v29 = vsel %vm699_vm9, %v705_v38, %v707_v4 }
 0x276   : > { %v951_v35 = vmul.f32 %v2318_v45, %v947_v63  ;;  %v528_v22 = vand.u32 2147483647, %v524_v43  ;;  %v529_v11 = vand.u32 2147483647, %v525_v46  ;;  %v532_v57 = vmul.f32 %v509_v37, %v1834_v1 }
 0x277   : > { %v533_v0 = vmul.f32 %v511_v6, %v1844_v3  ;;  %v534_v2 = vmul.f32 %v530_v33, %v526_v54  ;;  %v539_v36 = vmul.f32 %v1342_v24, %v535_v61  ;;  %v727_v13 = vsub.f32 %v703_v53, %v1886_v51 }
 0x278   : > { %v730_v58 = vand.u32 2147483647, %v726_v56  ;;  %v734_v50 = vmul.f32 %v709_v29, %v1834_v1  ;;  %v736_v52 = vmul.f32 %v732_v23, %v728_v12  ;;  %v737_v30 = vmul.f32 %v733_v40, %v729_v19 }
 0x279   : > { %v768_v63 = vmul.f32 %v2305_v16, %v2241_v60  ;;  %v949_v14 = vmul.f32 %v945_v21, %v2320_v59  ;;  %v711_v17 = vsel %vm699_vm9, %v707_v4, %v705_v38  ;;  %v1346_v37 = vsel %vm719_vm1, 1.0, %v1625_v18 }
 0x27a   : > { %v952_v6 = vmul.f32 %v2212_v39, %v948_v41  ;;  %v954_v8 = vsel %vm329_vm12, %v950_v25, 0.0  ;;  %v955_v27 = vsel %vm329_vm12, %v951_v35, 0.0  ;;  %v536_v31 = vmul.f32 %v532_v57, %v528_v22 }
 0x27b   : > { %v537_v1 = vmul.f32 %v533_v0, %v529_v11  ;;  %v542_v20 = vsel %vm329_vm12, %v534_v2, 0.0  ;;  %v543_v15 = vsel %vm329_vm12, %v539_v36, 0.0  ;;  %v731_v16 = vand.u32 2147483647, %v727_v13 }
 0x27c   : > { %v735_v59 = vmul.f32 %v711_v17, %v1844_v3  ;;  %v738_v44 = vmul.f32 %v734_v50, %v730_v58  ;;  %v740_v38 = vmul.f32 %v2291_v26, %v736_v52  ;;  %v741_v4 = vmul.f32 %v1346_v37, %v737_v30 }
 0x27d   : > { %v561_v34 = vadd.f32 %v2280_v5, %v2276_v32  ;;  %v769_v43 = vsel %vm329_vm12, %v2313_v47, 0.0  ;;  %v770_v46 = vsel %vm329_vm12, %v768_v63, 0.0  ;;  %v953_v54 = vmul.f32 %v2318_v45, %v949_v14 }
 0x27e   : > { %v956_v33 = vadd.f32 %v955_v27, %v954_v8  ;;  %v957_v61 = vsel %vm329_vm12, %v952_v6, 0.0  ;;  %v541_v53 = vmul.f32 %v1342_v24, %v537_v1  ;;  %v544_v56 = vadd.f32 %v543_v15, %v542_v20 }
 0x27f   : > { %v545_v3 = vsel %vm329_vm12, %v536_v31, 0.0  ;;  %v739_v12 = vmul.f32 %v735_v59, %v731_v16  ;;  %v742_v19 = vmul.f32 %v2291_v26, %v738_v44  ;;  %v744_v23 = vsel %vm329_vm12, %v740_v38, 0.0 }
 0x280   : > { %v745_v32 = vsel %vm329_vm12, %v741_v4, 0.0  ;;  %v771_v5 = vadd.f32 %v770_v46, %v769_v43  ;;  %v958_v47 = vadd.f32 %v957_v61, %v956_v33  ;;  %v959_v40 = vsel %vm329_vm12, %v953_v54, 0.0  ;;  %v1484_v4 = vld [vmem:[%s1828_s28] sm:$0xff] }
 0x281   : > { %v546_v45 = vadd.f32 %v545_v3, %v544_v56  ;;  %v746_v21 = vadd.f32 %v745_v32, %v744_v23  ;;  %v547_v41 = vsel %vm329_vm12, %v541_v53, 0.0  ;;  %v743_v24 = vmul.f32 %v1346_v37, %v739_v12  ;;  %v1486_v53 = vld [vmem:[%s1828_s28 + $0x10] sm:$0xff]  ;;  %v1487_v56 = vld [vmem:[%s1828_s28 + $0x18] sm:$0xff] }
 0x282   : > { %v747_v25 = vsel %vm329_vm12, %v742_v19, 0.0  ;;  %v1354_v26 = vsel %vm2008_vm7, 1.0, %v1625_v18  ;;  %v960_v29 = vadd.f32 %v959_v40, %v958_v47  ;;  %v977_v57 = vmul.f32 %v2212_v39, %v2239_v55 }
 0x283   : > { %v548_v35 = vadd.f32 %v547_v41, %v546_v45  ;;  %v748_v22 = vadd.f32 %v747_v25, %v746_v21  ;;  %v749_v11 = vsel %vm329_vm12, %v743_v24, 0.0  ;;  %v978_v0 = vmul.f32 %v1354_v26, %v2241_v60 }
 0x284   : > { %v979_v36 = vsel %vm329_vm12, %v977_v57, 0.0  ;;  %v1127_v37 = vsub.f32 %v1876_v48, %v1866_v42  ;;  %v1128_v8 = vsub.f32 %v1866_v42, %v1876_v48  ;;  %v1129_v15 = vsub.f32 %v1886_v51, %v1879_v49 }
 0x285   : > { %v750_v2 = vadd.f32 %v749_v11, %v748_v22  ;;  %v980_v13 = vsel %vm329_vm12, %v978_v0, 0.0  ;;  %v1130_v54 = vsub.f32 %v1879_v49, %v1886_v51  ;;  %v1136_v3 = vmul.f32 %v1487_v56, %v1486_v53 }
 0x286   : > { %v981_v18 = vadd.f32 %v980_v13, %v979_v36  ;;  %v1131_v16 = vand.u32 2147483647, %v1127_v37  ;;  %v1132_v38 = vand.u32 2147483647, %v1128_v8  ;;  %v1133_v33 = vand.u32 2147483647, %v1129_v15 }
 0x287   : > { %vm1183_vm7 = vcmp.eq.s32.totalorder %v1933_v10, 0  ;;  %vm1205_vm5 = vcmp.eq.s32.totalorder %v1933_v10, 3 }
 0x288   : > { %v1139_v47 = vmul.f32 %v1136_v3, %v1133_v33  ;;  %vm1184_vm4 = vmand %vm1182_vm14, %vm1183_vm7 }
 0x289   : > { %vm1188_vm13 = vmand %vm1187_vm6, %vm1183_vm7 }
 0x28a   : > { %v1143_v49 = vmul.f32 %v2220_v62, %v1139_v47  ;;  %vm1206_vm9 = vmand %vm1182_vm14, %vm1205_vm5 }
 0x28b   : > { %vm1209_vm10 = vmand %vm1187_vm6, %vm1205_vm5 }
 0x28c   : > { %v1148_v0 = vsel %vm329_vm12, %v1143_v49, 0.0 }
 0x28e   : > { %562 = vadd.xlane.f32.xlu0 %v561_v34  ;;  %v1485_v34 = vld [vmem:[%s1828_s28 + $0x8] sm:$0xff] }
 0x28f   : > { %v1135_v42 = vmul.f32 %v1485_v34, %v1484_v4 }
 0x291   : > { %v1137_v12 = vmul.f32 %v1135_v42, %v1131_v16  ;;  %v1138_v19 = vmul.f32 %v1135_v42, %v1132_v38 }
 0x292   : > { %772 = vadd.xlane.f32.xlu0 %v771_v5  ;;  %v1134_v5 = vand.u32 2147483647, %v1130_v54 }
 0x293   : > { %v1141_v40 = vmul.f32 %v2220_v62, %v1137_v12  ;;  %v1142_v45 = vmul.f32 0.0, %v1138_v19 }
 0x294   : > { %v1140_v41 = vmul.f32 %v1136_v3, %v1134_v5 }
 0x295   : > { %v1145_v51 = vsel %vm329_vm12, %v1141_v40, 0.0  ;;  %v1146_v24 = vsel %vm329_vm12, %v1142_v45, 0.0 }
 0x296   : > { %961 = vadd.xlane.f32.xlu0 %v960_v29  ;;  %v1147_v22 = vadd.f32 %v1146_v24, %v1145_v51  ;;  %v1144_v57 = vmul.f32 0.0, %v1140_v41 }
 0x297   : > { %549 = vadd.xlane.f32.xlu1 %v548_v35 }
 0x29b   : > { %751 = vadd.xlane.f32.xlu1 %v750_v2 }
 0x29f   : > { %982 = vadd.xlane.f32.xlu1 %v981_v18 }
 0x2b9   : > { %v469_v58 = vpop.permute.xlu1 %468 }
 0x2ba   : > { %v479_v39 = vsel %vm329_vm12, %v469_v58, 0.0  ;;  %v1149_v58 = vadd.f32 %v1148_v0, %v1147_v22 }
 0x2bd   : > { %v467_v28 = vpop.permute.xlu0 %466 }
 0x2be   : > { %v478_v52 = vsel %vm329_vm12, %v467_v28, 0.0 }
 0x2bf   : > { %v480_v60 = vadd.f32 %v479_v39, %v478_v52 }
 0x2c1   : > { %v471_v50 = vpop.permute.xlu0 %470  ;;  %v667_v30 = vpop.permute.xlu1 %666 }
 0x2c2   : > { %v481_v55 = vsel %vm329_vm12, %v471_v50, 0.0  ;;  %v678_v59 = vsel %vm329_vm12, %v667_v30, 0.0  ;;  %v1150_v30 = vsel %vm329_vm12, %v1144_v57, 0.0 }
 0x2c3   : > { %v482_v14 = vadd.f32 %v481_v55, %v480_v60 }
 0x2c5   : > { %v669_v63 = vpop.permute.xlu0 %668 }
 0x2c6   : > { %v679_v1 = vsel %vm329_vm12, %v669_v63, 0.0 }
 0x2c7   : > { %v680_v48 = vadd.f32 %v679_v1, %v678_v59 }
 0x2c9   : > { %v473_v17 = vpop.permute.xlu1 %472  ;;  %v671_v27 = vpop.permute.xlu0 %670 }
 0x2ca   : > { %v483_v6 = vsel %vm329_vm12, %v473_v17, 0.0  ;;  %v681_v44 = vsel %vm329_vm12, %v671_v27, 0.0 }
 0x2cb   : > { %v484_v31 = vadd.f32 %v483_v6, %v482_v14  ;;  %v682_v43 = vadd.f32 %v681_v44, %v680_v48  ;;  %v1151_v14 = vadd.f32 %v1150_v30, %v1149_v58 }
 0x2cd   : > { %v877_v20 = vpop.permute.xlu1 %876  ;;  %485 = vadd.xlane.f32.xlu0 %v484_v31  ;;  %v879_v23 = vpop.permute.xlu0 %878 }
 0x2ce   : > { %v889_v25 = vsel %vm329_vm12, %v879_v23, 0.0  ;;  %v888_v26 = vsel %vm329_vm12, %v877_v20, 0.0 }
 0x2cf   : > { %v890_v2 = vadd.f32 %v889_v25, %v888_v26 }
 0x2d1   : > { %v673_v46 = vpop.permute.xlu1 %672  ;;  %v881_v21 = vpop.permute.xlu0 %880 }
 0x2d2   : > { %v683_v61 = vsel %vm329_vm12, %v673_v46, 0.0  ;;  %v891_v11 = vsel %vm329_vm12, %v881_v21, 0.0 }
 0x2d3   : > { %v684_v32 = vadd.f32 %v683_v61, %v682_v43  ;;  %v892_v13 = vadd.f32 %v891_v11, %v890_v2 }
 0x2d5   : > { %685 = vadd.xlane.f32.xlu0 %v684_v32 }
 0x2dd   : > { %v1089_v29 = vpop.permute.xlu0 %1088  ;;  %v1087_v35 = vpop.permute.xlu1 %1086 }
 0x2de   : > { %v1099_v36 = vsel %vm329_vm12, %v1089_v29, 0.0  ;;  %v1098_v62 = vsel %vm329_vm12, %v1087_v35, 0.0 }
 0x2df   : > { %v1100_v63 = vadd.f32 %v1099_v36, %v1098_v62 }
 0x2e1   : > { %v1091_v18 = vpop.permute.xlu0 %1090  ;;  %v883_v28 = vpop.permute.xlu1 %882 }
 0x2e2   : > { %v1101_v50 = vsel %vm329_vm12, %v1091_v18, 0.0  ;;  %v893_v52 = vsel %vm329_vm12, %v883_v28, 0.0 }
 0x2e3   : > { %v894_v39 = vadd.f32 %v893_v52, %v892_v13  ;;  %v1102_v55 = vadd.f32 %v1101_v50, %v1100_v63 }
 0x2e5   : > { %v1093_v60 = vpop.permute.xlu1 %1092  ;;  %895 = vadd.xlane.f32.xlu1 %v894_v39 }
 0x2e6   : > { %v1103_v17 = vsel %vm329_vm12, %v1093_v60, 0.0  ;;  %vm1198_vm12 = vcmp.eq.s32.totalorder %v1933_v10, 2 }
 0x2e7   : > { %v1104_v37 = vadd.f32 %v1103_v17, %v1102_v55  ;;  %vm2487_vm3 = vmand %vm1182_vm14, %vm1198_vm12 }
 0x2e8   : > { %vm1202_vm15 = vmand %vm1187_vm6, %vm1198_vm12 }
 0x2e9   : > { %1105 = vadd.xlane.f32.xlu0 %v1104_v37  ;;  %1152 = vadd.xlane.f32.xlu1 %v1151_v14 }
 0x2ed   : > { %1173 = vadd.xlane.f32.xlu0 %v2283_v7 }
 0x317   : > { %v563_v6 = vpop.xlane.xlu0 %562 }
 0x318   : > { %v564_v1 = vrot.slane %v563_v6, 4 }
 0x31a   : > { %v565_v16 = vadd.f32 %v564_v1, %v563_v6 }
 0x31b   : > { %v773_v27 = vpop.xlane.xlu0 %772 }
 0x31c   : > { %v566_v4 = vrot.slane %v565_v16, 2  ;;  %v774_v42 = vrot.slane %v773_v27, 4 }
 0x31e   : > { %v567_v33 = vadd.f32 %v566_v4, %v565_v16  ;;  %v775_v7 = vadd.f32 %v774_v42, %v773_v27 }
 0x31f   : > { %v962_v20 = vpop.xlane.xlu0 %961 }
 0x320   : > { %v550_v8 = vpop.xlane.xlu1 %549  ;;  %v568_v12 = vrot.slane %v567_v33, 1  ;;  %v776_v23 = vrot.slane %v775_v7, 2  ;;  %v963_v29 = vrot.slane %v962_v20, 4 }
 0x321   : > { %v551_v31 = vrot.slane %v550_v8, 4 }
 0x322   : > { %v569_v41 = vadd.f32 %v568_v12, %v567_v33  ;;  %v777_v24 = vadd.f32 %v776_v23, %v775_v7  ;;  %v964_v2 = vadd.f32 %v963_v29, %v962_v20 }
 0x323   : > { %v552_v15 = vadd.f32 %v551_v31, %v550_v8 }
 0x324   : > { %v752_v59 = vpop.xlane.xlu1 %751  ;;  %v778_v11 = vrot.slane %v777_v24, 1  ;;  %v965_v13 = vrot.slane %v964_v2, 2 }
 0x325   : > { %v553_v44 = vrot.slane %v552_v15, 2  ;;  %v753_v38 = vrot.slane %v752_v59, 4 }
 0x326   : > { %v779_v62 = vadd.f32 %v778_v11, %v777_v24  ;;  %v966_v63 = vadd.f32 %v965_v13, %v964_v2 }
 0x327   : > { %v754_v43 = vadd.f32 %v753_v38, %v752_v59  ;;  %v554_v46 = vadd.f32 %v553_v44, %v552_v15 }
 0x328   : > { %v983_v51 = vpop.xlane.xlu1 %982  ;;  %v967_v27 = vrot.slane %v966_v63, 1 }
 0x329   : > { %v755_v53 = vrot.slane %v754_v43, 2  ;;  %v555_v56 = vrot.slane %v554_v46, 1  ;;  %v984_v35 = vrot.slane %v983_v51, 4 }
 0x32b   : > { %v556_v47 = vadd.f32 %v555_v56, %v554_v46  ;;  %v756_v40 = vadd.f32 %v755_v53, %v754_v43  ;;  %v985_v36 = vadd.f32 %v984_v35, %v983_v51 }
 0x32d   : > { %v757_v25 = vrot.slane %v756_v40, 1  ;;  %v986_v18 = vrot.slane %v985_v36, 2 }
 0x32f   : > { %v758_v57 = vadd.f32 %v757_v25, %v756_v40  ;;  %v987_v39 = vadd.f32 %v986_v18, %v985_v36 }
 0x331   : > { %v988_v31 = vrot.slane %v987_v39, 1 }
 0x356   : > { %v486_v34 = vpop.xlane.xlu0 %485 }
 0x357   : > { %v487_v48 = vrot.slane %v486_v34, 4 }
 0x359   : > { %v488_v54 = vadd.f32 %v487_v48, %v486_v34  ;;  %v968_v34 = vadd.f32 %v967_v27, %v966_v63  ;;  %v989_v48 = vadd.f32 %v988_v31, %v987_v39 }
 0x35b   : > { %v489_v61 = vrot.slane %v488_v54, 2 }
 0x35d   : > { %v490_v3 = vadd.f32 %v489_v61, %v488_v54 }
 0x35e   : > { %v686_v19 = vpop.xlane.xlu0 %685 }
 0x35f   : > { %v687_v32 = vrot.slane %v686_v19, 4  ;;  %v491_v5 = vrot.slane %v490_v3, 1 }
 0x361   : > { %v688_v45 = vadd.f32 %v687_v32, %v686_v19  ;;  %v492_v21 = vadd.f32 %v491_v5, %v490_v3 }
 0x363   : > { %v689_v49 = vrot.slane %v688_v45, 2  ;;  %1368 = vpush %v492_v21 }
 0x364   : > { %1370 = vpush %v556_v47 }
 0x365   : > { %1372 = vpush %v569_v41  ;;  %v690_v26 = vadd.f32 %v689_v49, %v688_v45 }
 0x367   : > { %v691_v22 = vrot.slane %v690_v26, 1 }
 0x369   : > { %v692_v0 = vadd.f32 %v691_v22, %v690_v26 }
 0x36b   : > { %1374 = vpush %v692_v0 }
 0x36c   : > { %1376 = vpush %v758_v57 }
 0x36d   : > { %1378 = vpush %v779_v62 }
 0x36e   : > { %v896_v28 = vpop.xlane.xlu1 %895 }
 0x36f   : > { %v897_v58 = vrot.slane %v896_v28, 4 }
 0x371   : > { %v898_v50 = vadd.f32 %v897_v58, %v896_v28 }
 0x372   : > { %v1106_v52 = vpop.xlane.xlu0 %1105  ;;  %v1153_v30 = vpop.xlane.xlu1 %1152 }
 0x373   : > { %v899_v55 = vrot.slane %v898_v50, 2  ;;  %v1107_v60 = vrot.slane %v1106_v52, 4  ;;  %v1154_v14 = vrot.slane %v1153_v30, 4 }
 0x375   : > { %v1108_v17 = vadd.f32 %v1107_v60, %v1106_v52  ;;  %v1155_v37 = vadd.f32 %v1154_v14, %v1153_v30  ;;  %v900_v6 = vadd.f32 %v899_v55, %v898_v50 }
 0x376   : > { %v1174_v8 = vpop.xlane.xlu0 %1173 }
 0x377   : > { %v1109_v1 = vrot.slane %v1108_v17, 2  ;;  %v1156_v20 = vrot.slane %v1155_v37, 2  ;;  %v1175_v15 = vrot.slane %v1174_v8, 4  ;;  %v901_v16 = vrot.slane %v900_v6, 1 }
 0x379   : > { %v1157_v59 = vadd.f32 %v1156_v20, %v1155_v37  ;;  %v1176_v44 = vadd.f32 %v1175_v15, %v1174_v8  ;;  %v902_v38 = vadd.f32 %v901_v16, %v900_v6  ;;  %v1110_v4 = vadd.f32 %v1109_v1, %v1108_v17 }
 0x37b   : > { %v1177_v42 = vrot.slane %v1176_v44, 2  ;;  %1380 = vpush %v902_v38  ;;  %v1111_v43 = vrot.slane %v1110_v4, 1  ;;  %v1158_v46 = vrot.slane %v1157_v59, 1 }
 0x37c   : > { %1382 = vpush %v968_v34 }
 0x37d   : > { %v1178_v54 = vadd.f32 %v1177_v42, %v1176_v44  ;;  %1384 = vpush %v989_v48  ;;  %v1112_v33 = vadd.f32 %v1111_v43, %v1110_v4  ;;  %v1159_v7 = vadd.f32 %v1158_v46, %v1157_v59 }
 0x37f   : > { %1386 = vpush %v1112_v33  ;;  %v1179_v61 = vrot.slane %v1178_v54, 1 }
 0x380   : > { %1388 = vpush %v1159_v7 }
 0x381   : > { %v1180_v53 = vadd.f32 %v1179_v61, %v1178_v54 }
 0x383   : > { %1390 = vpush %v1180_v53 }
 0x394   : > { %s1369_s24 = spop %1368 }
 0x395   : > { %s1371_s23 = spop %1370 }
 0x396   : > { %s1373_s10 = spop %1372  ;;  %s558_s4 = sadd.f32 %s1371_s23, %s1369_s24 }
 0x397   : > { %v1189_v12 = vstv %s1373_s10 }
 0x398   : > { %v1185_v56 = vstv %s558_s4 }
 0x399   : > { %v1186_v3 = vsel %vm1184_vm4, %v1185_v56, 0.0 }
 0x39a   : > { %v1190_v32 = vsel %vm1188_vm13, %v1189_v12, %v1186_v3 }
 0x39c   : > { %s1375_s12 = spop %1374 }
 0x39d   : > { %s1377_s7 = spop %1376 }
 0x39e   : > { %s760_s18 = sadd.f32 %s1377_s7, %s1375_s12  ;;  %s1379_s29 = spop %1378 }
 0x39f   : > { %v1196_v40 = vstv %s1379_s29 }
 0x3a0   : > { %v1193_v23 = vstv %s760_s18 }
 0x3a1   : > { %v1194_v5 = vsel %vm2473_vm8, %v1193_v23, %v1190_v32 }
 0x3a2   : > { %v1197_v45 = vsel %vm1195_vm2, %v1196_v40, %v1194_v5 }
 0x3ac   : > { %s1381_s19 = spop %1380 }
 0x3ad   : > { %s1383_s25 = spop %1382 }
 0x3ae   : > { %s970_s27 = sadd.f32 %s1383_s25, %s1381_s19  ;;  %s1385_s5 = spop %1384 }
 0x3af   : > { %v1203_v49 = vstv %s1385_s5 }
 0x3b0   : > { %v1200_v21 = vstv %s970_s27  ;;  %s1387_s28 = spop %1386 }
 0x3b1   : > { %v1201_v41 = vsel %vm2487_vm3, %v1200_v21, %v1197_v45  ;;  %s1389_s30 = spop %1388 }
 0x3b2   : > { %s1161_s6 = sadd.f32 %s1389_s30, %s1387_s28  ;;  %v1204_v51 = vsel %vm1202_vm15, %v1203_v49, %v1201_v41 }
 0x3b4   : > { %v1207_v24 = vstv %s1161_s6  ;;  %s1391_s9 = spop %1390 }
 0x3b5   : > { %v1208_v10 = vsel %vm1206_vm9, %v1207_v24, %v1204_v51  ;;  %v1210_v25 = vstv %s1391_s9 }
 0x3b6   : > { %v1211_v26 = vsel %vm1209_vm10, %v1210_v25, %v1208_v10 }
 0x3b7   : > { %1212 = vst [vmem:[%s271_s8] sm:$0xff] %v1211_v26 }
 0x3b8 PF: > { %p16_p4 = scmp.ge.s32.totalorder %s1669_s17, 5   ;;  %s2555_s12 = smov %s1602_s13 }
 0x3b9   : > { %s2556_s13 = smov %s1606_s14  ;;  %s2557_s14 = smov %s1679_s20 }
 0x3ba   : > { %s2558_s15 = smov %s1669_s17  ;;  %18 = sbr.rel (!%p16_p4) target bundleno = 5 (0x5), region = 96 }
 0x3bf   :  { %1232 = vsyncpa [#allocation3], 1 }
 0x3c0   :  { %1234 = vsyncpa [#allocation3 + $0x1], 1 }
 0x3c1   :  { %1235 = vsyncpa [#allocation5], 1 }
 0x3c2   :  { %1237 = vsyncpa [#allocation5 + $0x1], 1 }

</bundles_post_ra>
